<compile_context>
chip_gen: v6e
topology: v6e:2x2x1
jax: 0.10.0
libtpu: 0.0.40
codegen_flags: <defaults>
</compile_context>

<pallas_src>
import functools
import math

import jax
import jax.numpy as jnp
from jax.experimental import pallas as pl
from jax.experimental.pallas import tpu as pltpu


# ----------------------------------------------------------------------------
# per-generation tuning knobs
# ----------------------------------------------------------------------------

try:
    _CP = pltpu.CompilerParams
except AttributeError:            # older jax spelling
    _CP = pltpu.TPUCompilerParams


def _device_kind():
    try:
        return jax.devices()[0].device_kind.lower()
    except Exception:
        return ""


_IS_V7 = "v7" in _device_kind()
_ROW_CAP = 256 if _IS_V7 else 512                 # v7x: 64 MiB VMEM per TC
_VMEM_LIMIT_BYTES = (56 if _IS_V7 else 100) * 1024 * 1024


def _cparams(*sem):
    return _CP(dimension_semantics=sem, vmem_limit_bytes=_VMEM_LIMIT_BYTES)


def _row_tile(M):
    return M if M <= _ROW_CAP else _ROW_CAP


def _seq_tile(S):
    for t in (_ROW_CAP, 256, 128):
        if S > t and S % t == 0:
            return t
    return S


def _f_tile(F):
    for t in (2048, 1024, 512):
        if F > t and F % t == 0:
            return t
    return F


def _col_tile(N):
    for t in (2048, 1024, 512, 256):
        if N > t and N % t == 0:
            return t
    return N


# ----------------------------------------------------------------------------
# small math helpers (in-kernel)
# ----------------------------------------------------------------------------

def _ln(x, g, b):
    mu = jnp.mean(x, axis=-1, keepdims=True)
    var = jnp.mean(jnp.square(x - mu), axis=-1, keepdims=True)
    return (x - mu) * jax.lax.rsqrt(var + 1e-5) * g + b


def _gelu(h):
    c = math.sqrt(2.0 / math.pi)
    return 0.5 * h * (1.0 + jnp.tanh(c * (h + 0.044715 * h * h * h)))


# ----------------------------------------------------------------------------
# Pallas kernels
# ----------------------------------------------------------------------------

def _ln_qkv_kernel(x_ref, g_ref, b_ref, w_ref, bias_ref, q_ref, kv_ref, *, D):
    """q, kv = LN(x) @ Wqkv + bqkv (single fused [D, 3D] matmul), bf16 out."""
    xn = _ln(x_ref[...], g_ref[...], b_ref[...])
    o = jnp.dot(xn.astype(jnp.bfloat16), w_ref[...],
                preferred_element_type=jnp.float32) + bias_ref[...]
    q_ref[...] = o[:, :D].astype(q_ref.dtype)
    kv_ref[...] = o[:, D:].astype(kv_ref.dtype)


def _ln_linear_kernel(x_ref, g_ref, b_ref, w_ref, bias_ref, o_ref):
    """o = LN(x) @ W + b  (bf16 out)."""
    xn = _ln(x_ref[...], g_ref[...], b_ref[...])
    o = jnp.dot(xn.astype(jnp.bfloat16), w_ref[...],
                preferred_element_type=jnp.float32) + bias_ref[...]
    o_ref[...] = o.astype(o_ref.dtype)


def _linear_kernel(x_ref, w_ref, b_ref, o_ref):
    """o = x @ W + b  (bf16 out)."""
    o = jnp.dot(x_ref[...].astype(jnp.bfloat16), w_ref[...],
                preferred_element_type=jnp.float32) + b_ref[...]
    o_ref[...] = o.astype(o_ref.dtype)


def _ln_ffn_kernel(x_ref, g_ref, b_ref, w1_ref, b1_ref, w2_ref, b2_ref, o_ref,
                   acc_ref, xn_ref):
    """o = x + FFN(LN(x)) with the FFN hidden (F) dimension blocked on grid
    axis 1 ('arbitrary'): per-block partial products accumulate in VMEM."""
    j = pl.program_id(1)

    @pl.when(j == 0)
    def _():
        xn = _ln(x_ref[...], g_ref[...], b_ref[...])
        xn_ref[...] = xn.astype(jnp.bfloat16)
        acc_ref[...] = jnp.zeros_like(acc_ref)

    h = jnp.dot(xn_ref[...], w1_ref[...],
                preferred_element_type=jnp.float32) + b1_ref[...]
    h = _gelu(h)
    acc_ref[...] += jnp.dot(h.astype(jnp.bfloat16), w2_ref[...],
                            preferred_element_type=jnp.float32)

    @pl.when(j == pl.num_programs(1) - 1)
    def _():
        o_ref[...] = (x_ref[...] + acc_ref[...] + b2_ref[...]).astype(o_ref.dtype)


def _lm_dense_kernel(x_ref, dw_ref, db_ref, g_ref, b_ref, o_ref):
    """o = LN(gelu(x @ Wd + bd))  (bf16 out, feeds the vocab-tiled matmul)."""
    h = jnp.dot(x_ref[...].astype(jnp.bfloat16), dw_ref[...],
                preferred_element_type=jnp.float32) + db_ref[...]
    h = _gelu(h)
    hn = _ln(h, g_ref[...], b_ref[...])
    o_ref[...] = hn.astype(o_ref.dtype)


def _matmul_bias_kernel(x_ref, w_ref, b_ref, o_ref):
    """o = x @ W + b  (used for the vocab-tiled, weight-tied LM projection)."""
    o = jnp.dot(x_ref[...], w_ref[...],
                preferred_element_type=jnp.float32) + b_ref[...]
    o_ref[...] = o.astype(o_ref.dtype)


def _attn_kernel(q_ref, kv_ref, bias_ref, wo_ref, bo_ref, res_ref, o_ref,
                 ctx_ref, *, num_heads, scale):
    """All heads of one (batch, query-block); per-head context is flushed into
    a bf16 VMEM scratch, then ONE full-depth [tq,D]x[D,D] output projection
    with the residual folded into the epilogue."""
    D = q_ref.shape[-1]
    Dh = D // num_heads
    bias = bias_ref[0].astype(jnp.float32)          # [tq, Sk], shared by heads

    for h in range(num_heads):
        sl = slice(h * Dh, (h + 1) * Dh)
        q_h = q_ref[0, :, sl]                        # [tq, Dh] bf16
        k_h = kv_ref[0, :, sl]                       # [Sk, Dh] bf16
        v_h = kv_ref[0, :, D + h * Dh:D + (h + 1) * Dh]
        s = jax.lax.dot_general(q_h, k_h, (((1,), (1,)), ((), ())),
                                preferred_element_type=jnp.float32)
        s = s * scale + bias
        m = jnp.max(s, axis=-1, keepdims=True)
        p = jnp.exp(s - m)
        denom = jnp.sum(p, axis=-1, keepdims=True)
        p = p * pl.reciprocal(denom, approx=True)
        ctx_h = jnp.dot(p.astype(jnp.bfloat16), v_h,
                        preferred_element_type=jnp.float32)
        ctx_ref[:, sl] = ctx_h.astype(ctx_ref.dtype)

    proj = jnp.dot(ctx_ref[...], wo_ref[...],
                   preferred_element_type=jnp.float32)
    o_ref[0] = (res_ref[0] + proj + bo_ref[...]).astype(o_ref.dtype)


# ----------------------------------------------------------------------------
# pallas_call wrappers
# ----------------------------------------------------------------------------

def ln_qkv(x, g, b, w, bias):
    M, D = x.shape
    N = w.shape[1]                                  # 3D
    tm = _row_tile(M)
    return pl.pallas_call(
        functools.partial(_ln_qkv_kernel, D=D),
        out_shape=(jax.ShapeDtypeStruct((M, D), jnp.bfloat16),
                   jax.ShapeDtypeStruct((M, 2 * D), jnp.bfloat16)),
        grid=(pl.cdiv(M, tm),),
        in_specs=[
            pl.BlockSpec((tm, D), lambda i: (i, 0)),
            pl.BlockSpec((1, D), lambda i: (0, 0)),
            pl.BlockSpec((1, D), lambda i: (0, 0)),
            pl.BlockSpec((D, N), lambda i: (0, 0)),
            pl.BlockSpec((1, N), lambda i: (0, 0)),
        ],
        out_specs=(pl.BlockSpec((tm, D), lambda i: (i, 0)),
                   pl.BlockSpec((tm, 2 * D), lambda i: (i, 0))),
        compiler_params=_cparams("parallel"),
    )(x, g.reshape(1, D), b.reshape(1, D), w, bias.reshape(1, N))


def ln_linear(x, g, b, w, bias):
    M, D = x.shape
    N = w.shape[1]
    tm = _row_tile(M)
    return pl.pallas_call(
        _ln_linear_kernel,
        out_shape=jax.ShapeDtypeStruct((M, N), jnp.bfloat16),
        grid=(pl.cdiv(M, tm),),
        in_specs=[
            pl.BlockSpec((tm, D), lambda i: (i, 0)),
            pl.BlockSpec((1, D), lambda i: (0, 0)),
            pl.BlockSpec((1, D), lambda i: (0, 0)),
            pl.BlockSpec((D, N), lambda i: (0, 0)),
            pl.BlockSpec((1, N), lambda i: (0, 0)),
        ],
        out_specs=pl.BlockSpec((tm, N), lambda i: (i, 0)),
        compiler_params=_cparams("parallel"),
    )(x, g.reshape(1, D), b.reshape(1, D), w, bias.reshape(1, N))


def linear(x, w, bias):
    M, K = x.shape
    N = w.shape[1]
    tm = _row_tile(M)
    return pl.pallas_call(
        _linear_kernel,
        out_shape=jax.ShapeDtypeStruct((M, N), jnp.bfloat16),
        grid=(pl.cdiv(M, tm),),
        in_specs=[
            pl.BlockSpec((tm, K), lambda i: (i, 0)),
            pl.BlockSpec((K, N), lambda i: (0, 0)),
            pl.BlockSpec((1, N), lambda i: (0, 0)),
        ],
        out_specs=pl.BlockSpec((tm, N), lambda i: (i, 0)),
        compiler_params=_cparams("parallel"),
    )(x, w, bias.reshape(1, N))


def ln_ffn(x, g, b, w1, b1, w2, b2):
    M, D = x.shape
    F = w1.shape[1]
    tm = _row_tile(M)
    tf = _f_tile(F)
    return pl.pallas_call(
        _ln_ffn_kernel,
        out_shape=jax.ShapeDtypeStruct((M, D), jnp.float32),
        grid=(pl.cdiv(M, tm), F // tf),
        in_specs=[
            pl.BlockSpec((tm, D), lambda i, j: (i, 0)),
            pl.BlockSpec((1, D), lambda i, j: (0, 0)),
            pl.BlockSpec((1, D), lambda i, j: (0, 0)),
            pl.BlockSpec((D, tf), lambda i, j: (0, j)),
            pl.BlockSpec((1, tf), lambda i, j: (0, j)),
            pl.BlockSpec((tf, D), lambda i, j: (j, 0)),
            pl.BlockSpec((1, D), lambda i, j: (0, 0)),
        ],
        out_specs=pl.BlockSpec((tm, D), lambda i, j: (i, 0)),
        scratch_shapes=[pltpu.VMEM((tm, D), jnp.float32),
                        pltpu.VMEM((tm, D), jnp.bfloat16)],
        compiler_params=_cparams("parallel", "arbitrary"),
    )(x, g.reshape(1, D), b.reshape(1, D), w1, b1.reshape(1, F), w2,
      b2.reshape(1, D))


def lm_dense(x, dw, db, g, b):
    M, D = x.shape
    tm = _row_tile(M)
    return pl.pallas_call(
        _lm_dense_kernel,
        out_shape=jax.ShapeDtypeStruct((M, D), jnp.bfloat16),
        grid=(pl.cdiv(M, tm),),
        in_specs=[
            pl.BlockSpec((tm, D), lambda i: (i, 0)),
            pl.BlockSpec((D, D), lambda i: (0, 0)),
            pl.BlockSpec((1, D), lambda i: (0, 0)),
            pl.BlockSpec((1, D), lambda i: (0, 0)),
            pl.BlockSpec((1, D), lambda i: (0, 0)),
        ],
        out_specs=pl.BlockSpec((tm, D), lambda i: (i, 0)),
        compiler_params=_cparams("parallel"),
    )(x, dw, db.reshape(1, D), g.reshape(1, D), b.reshape(1, D))


def lm_proj(y, wout, bout):
    """logits = y @ wout + bout, tiled over rows AND vocab blocks."""
    M, D = y.shape
    N = wout.shape[1]
    tm = _row_tile(M)
    tn = _col_tile(N)
    return pl.pallas_call(
        _matmul_bias_kernel,
        out_shape=jax.ShapeDtypeStruct((M, N), jnp.float32),
        grid=(pl.cdiv(M, tm), N // tn),
        in_specs=[
            pl.BlockSpec((tm, D), lambda i, j: (i, 0)),
            pl.BlockSpec((D, tn), lambda i, j: (0, j)),
            pl.BlockSpec((1, tn), lambda i, j: (0, j)),
        ],
        out_specs=pl.BlockSpec((tm, tn), lambda i, j: (i, j)),
        compiler_params=_cparams("parallel", "parallel"),
    )(y, wout, bout)


def attention(q, kv, bias, wo, bo, res, num_heads):
    """softmax(q k^T * scale + bias) v -> @Wo + bo + residual.
    Grid = (batch, query-blocks); bias is shipped as bf16."""
    B, Sq, D = q.shape
    Sk = kv.shape[1]
    scale = 1.0 / math.sqrt(D // num_heads)
    tq = _seq_tile(Sq)
    return pl.pallas_call(
        functools.partial(_attn_kernel, num_heads=num_heads, scale=scale),
        out_shape=jax.ShapeDtypeStruct((B, Sq, D), jnp.float32),
        grid=(B, Sq // tq),
        in_specs=[
            pl.BlockSpec((1, tq, D), lambda b, i: (b, i, 0)),
            pl.BlockSpec((1, Sk, 2 * D), lambda b, i: (b, 0, 0)),
            pl.BlockSpec((1, tq, Sk), lambda b, i: (b, i, 0)),
            pl.BlockSpec((D, D), lambda b, i: (0, 0)),
            pl.BlockSpec((1, D), lambda b, i: (0, 0)),
            pl.BlockSpec((1, tq, D), lambda b, i: (b, i, 0)),
        ],
        out_specs=pl.BlockSpec((1, tq, D), lambda b, i: (b, i, 0)),
        scratch_shapes=[pltpu.VMEM((tq, D), jnp.bfloat16)],
        compiler_params=_cparams("parallel", "parallel"),
    )(q, kv, bias, wo, bo.reshape(1, D), res)


# ----------------------------------------------------------------------------
# Model glue (plain JAX: embedding gather, free reshapes, layer schedule)
# ----------------------------------------------------------------------------

def encoder_layer(h, p, enc_bias, num_heads, B):
    M, D = h.shape
    S = M // B
    a = p["attn"]
    q, kv = ln_qkv(h, p["ln1_g"], p["ln1_b"], a["wqkv"], a["bqkv"])
    h = attention(q.reshape(B, S, D), kv.reshape(B, S, 2 * D), enc_bias,
                  a["wo"], a["bo"], h.reshape(B, S, D),
                  num_heads).reshape(M, D)
    return ln_ffn(h, p["ln2_g"], p["ln2_b"], p["w1"], p["b1"], p["w2"], p["b2"])


def decoder_layer(h_dec, h_enc, p, dec_bias, cross_bias, num_heads, B):
    M, D = h_dec.shape
    Sd = M // B
    Se = h_enc.shape[0] // B

    # self-attention (pre-LN, residual fused into the attention epilogue)
    sa = p["self_attn"]
    q, kv = ln_qkv(h_dec, p["ln1_g"], p["ln1_b"], sa["wqkv"], sa["bqkv"])
    h = attention(q.reshape(B, Sd, D), kv.reshape(B, Sd, 2 * D), dec_bias,
                  sa["wo"], sa["bo"], h_dec.reshape(B, Sd, D),
                  num_heads).reshape(M, D)

    # cross-attention: LN on the query side; encoder output used as-is for K/V
    ca = p["cross_attn"]
    q = ln_linear(h, p["ln2_g"], p["ln2_b"], ca["wq"], ca["bq"])
    kv = linear(h_enc, ca["wkv"], ca["bkv"])
    h = attention(q.reshape(B, Sd, D), kv.reshape(B, Se, 2 * D), cross_bias,
                  ca["wo"], ca["bo"], h.reshape(B, Sd, D),
                  num_heads).reshape(M, D)

    return ln_ffn(h, p["ln3_g"], p["ln3_b"], p["w1"], p["b1"], p["w2"], p["b2"])


def prepare_lm_out(embed, out_b):
    """Weight-tied LM head projection: lane-padded E^T, built once (not jitted)."""
    V, D = embed.shape
    V_pad = ((V + 127) // 128) * 128
    wout = jnp.zeros((D, V_pad), jnp.bfloat16).at[:, :V].set(
        embed.T.astype(jnp.bfloat16))
    bout = jnp.zeros((1, V_pad), jnp.float32).at[0, :V].set(out_b)
    return wout, bout


def pipet_forward(params, wout, bout, enc_in, dec_in, enc_bias, dec_bias,
                  cross_bias, *, num_heads):
    B, S_enc = enc_in.shape
    _, S_dec = dec_in.shape
    V, D = params["embed"].shape

    # ship the additive attention biases in bf16 (halves their HBM stream)
    enc_bias = enc_bias.astype(jnp.bfloat16)
    dec_bias = dec_bias.astype(jnp.bfloat16)
    cross_bias = cross_bias.astype(jnp.bfloat16)

    # embedding gather (glue, not a Pallas hot path)
    h_enc = jnp.take(params["embed"], enc_in, axis=0).reshape(B * S_enc, D)
    h_dec = jnp.take(params["embed"], dec_in, axis=0).reshape(B * S_dec, D)

    n_enc = len(params["enc_layers"])
    n_dec = len(params["dec_layers"])
    for i in range(n_enc):
        h_enc = encoder_layer(h_enc, params["enc_layers"][i], enc_bias,
                              num_heads, B)
        idx = n_dec - n_enc + i
        if idx >= 0:
            h_dec = decoder_layer(h_dec, h_enc, params["dec_layers"][idx],
                                  dec_bias, cross_bias, num_heads, B)

    # LM head: enc + dec rows concatenated so one call amortizes wout.
    lmp = params["lm_head"]
    M_enc = B * S_enc
    h_all = jnp.concatenate([h_enc, h_dec], axis=0)
    y = lm_dense(h_all, lmp["dense_w"], lmp["dense_b"], lmp["ln_g"], lmp["ln_b"])
    logits = lm_proj(y, wout, bout)[:, :V]
    enc_logits = logits[:M_enc].reshape(B, S_enc, V)
    dec_logits = logits[M_enc:].reshape(B, S_dec, V)
    return enc_logits, dec_logits


# ----------------------------------------------------------------------------
# Deterministic parameter initialization (synthetic, no checkpoint load)
# bf16 matmul weights (MXU-native), f32 biases / LN params / embedding.
# ----------------------------------------------------------------------------

def _w(key, shape, scale=0.02):
    return scale * jax.random.normal(key, shape, jnp.float32)


def _wb(key, shape, scale=0.02):
    return _w(key, shape, scale).astype(jnp.bfloat16)


def _zeros(n):
    return jnp.zeros((n,), jnp.float32)


def _init_self_attn(key, D):
    ks = jax.random.split(key, 2)
    return dict(wqkv=_wb(ks[0], (D, 3 * D)), bqkv=_zeros(3 * D),
                wo=_wb(ks[1], (D, D)), bo=_zeros(D))


def _init_cross_attn(key, D):
    ks = jax.random.split(key, 3)
    return dict(wq=_wb(ks[0], (D, D)), bq=_zeros(D),
                wkv=_wb(ks[1], (D, 2 * D)), bkv=_zeros(2 * D),
                wo=_wb(ks[2], (D, D)), bo=_zeros(D))


def _init_enc_layer(key, D, F):
    ks = jax.random.split(key, 3)
    return dict(
        ln1_g=jnp.ones((D,), jnp.float32), ln1_b=_zeros(D),
        attn=_init_self_attn(ks[0], D),
        ln2_g=jnp.ones((D,), jnp.float32), ln2_b=_zeros(D),
        w1=_wb(ks[1], (D, F)), b1=_zeros(F),
        w2=_wb(ks[2], (F, D)), b2=_zeros(D),
    )


def _init_dec_layer(key, D, F):
    ks = jax.random.split(key, 4)
    return dict(
        ln1_g=jnp.ones((D,), jnp.float32), ln1_b=_zeros(D),
        self_attn=_init_self_attn(ks[0], D),
        ln2_g=jnp.ones((D,), jnp.float32), ln2_b=_zeros(D),
        cross_attn=_init_cross_attn(ks[1], D),
        ln3_g=jnp.ones((D,), jnp.float32), ln3_b=_zeros(D),
        w1=_wb(ks[2], (D, F)), b1=_zeros(F),
        w2=_wb(ks[3], (F, D)), b2=_zeros(D),
    )


def init_params(key, vocab_size, D, n_enc, n_dec):
    F = 4 * D
    keys = jax.random.split(key, 2 + n_enc + n_dec)
    return dict(
        embed=_w(keys[0], (vocab_size, D)),
        enc_layers=[_init_enc_layer(keys[2 + i], D, F) for i in range(n_enc)],
        dec_layers=[_init_dec_layer(keys[2 + n_enc + i], D, F)
                    for i in range(n_dec)],
        lm_head=dict(
            dense_w=_wb(keys[1], (D, D)), dense_b=_zeros(D),
            ln_g=jnp.ones((D,), jnp.float32), ln_b=_zeros(D),
            out_b=_zeros(vocab_size),
        ),
    )


# ----------------------------------------------------------------------------
# Driver
# ----------------------------------------------------------------------------

if __name__ == "__main__":
    B, S_ENC, S_DEC = 2, 8, 8
    D, H = 32, 4
    N_ENC, N_DEC = 2, 2
    VOCAB = 12
    PAD = 0
    NEG = -1e9

    key = jax.random.PRNGKey(0)
    k_tok_e, k_tok_d, k_dist, k_par = jax.random.split(key, 4)

    enc_in = jax.random.randint(k_tok_e, (B, S_ENC), 1, VOCAB, dtype=jnp.int32)
    dec_in = jax.random.randint(k_tok_d, (B, S_DEC), 1, VOCAB, dtype=jnp.int32)
    enc_in = enc_in.at[1, -2:].set(PAD)   # some padding to exercise the masks
    dec_in = dec_in.at[1, -1:].set(PAD)

    enc_keep = (enc_in != PAD)            # [B, S_ENC] key-padding mask
    dec_keep = (dec_in != PAD)            # [B, S_DEC]

    # additive attention biases (0 = attend, -1e9 = masked), shared over heads
    enc_bias = jnp.broadcast_to(
        jnp.where(enc_keep[:, None, :], 0.0, NEG), (B, S_ENC, S_ENC)
    ).astype(jnp.float32)
    causal = jnp.tril(jnp.ones((S_DEC, S_DEC), jnp.bool_))
    dec_bias = jnp.where(causal[None, :, :] & dec_keep[:, None, :], 0.0, NEG
                         ).astype(jnp.float32)
    distances = jax.random.uniform(k_dist, (B, S_DEC, S_ENC), jnp.float32)
    cross_bias = (jnp.broadcast_to(jnp.where(enc_keep[:, None, :], 0.0, NEG),
                                   (B, S_DEC, S_ENC)) + distances
                  ).astype(jnp.float32)

    params = init_params(k_par, VOCAB, D, N_ENC, N_DEC)
    # weight-tied LM projection built once, outside the jitted forward
    wout, bout = prepare_lm_out(params["embed"], params["lm_head"]["out_b"])

    fwd = jax.jit(functools.partial(pipet_forward, num_heads=H))
    enc_logits, dec_logits = fwd(params, wout, bout, enc_in, dec_in,
                                 enc_bias, dec_bias, cross_bias)
    jax.block_until_ready((enc_logits, dec_logits))

    assert enc_logits.shape == (B, S_ENC, VOCAB)
    assert dec_logits.shape == (B, S_DEC, VOCAB)
    assert bool(jnp.all(jnp.isfinite(enc_logits)))
    assert bool(jnp.all(jnp.isfinite(dec_logits)))
    print("KERNEL_OK")
</pallas_src>

<mosaic_0001>
module attributes {stable_mosaic.version = 11 : i64} {
  func.func @_linear_kernel(%arg0: i32, %arg1: memref<16x32xf32, #tpu.memory_space<vmem>>, %arg2: memref<32x64xbf16, #tpu.memory_space<vmem>>, %arg3: memref<1x64xf32, #tpu.memory_space<vmem>>, %arg4: memref<16x64xbf16, #tpu.memory_space<vmem>>) attributes {dimension_semantics = [#tpu.dimension_semantics<parallel>], iteration_bounds = array<i64: 1>, scalar_prefetch = 0 : i64, scratch_operands = 0 : i64, tpu.core_type = #tpu.core_type<tc>, window_params = [{transform_indices = @transform_0, window_bounds = array<i64: 16, 32>}, {pipeline_mode = #tpu.pipeline_mode<synchronous>, transform_indices = @transform_1, window_bounds = array<i64: 32, 64>}, {pipeline_mode = #tpu.pipeline_mode<synchronous>, transform_indices = @transform_2, window_bounds = array<i64: 1, 64>}, {transform_indices = @transform_3, window_bounds = array<i64: 16, 64>}]} {
    %c0 = arith.constant 0 : index
    %c0_0 = arith.constant 0 : index
    %0 = vector.load %arg1[%c0, %c0_0] : memref<16x32xf32, #tpu.memory_space<vmem>>, vector<16x32xf32>
    %1 = arith.truncf %0 : vector<16x32xf32> to vector<16x32xbf16>
    %c0_1 = arith.constant 0 : index
    %c0_2 = arith.constant 0 : index
    %2 = vector.load %arg2[%c0_1, %c0_2] : memref<32x64xbf16, #tpu.memory_space<vmem>>, vector<32x64xbf16>
    %cst = arith.constant dense<0.000000e+00> : vector<16x64xf32>
    %3 = tpu.matmul %1, %2, %cst {dimension_numbers = #tpu.dot_dimension_numbers<[1], [0], [0], [1], [0, 0, 1, 1], [], []>} : vector<16x32xbf16>, vector<32x64xbf16>, vector<16x64xf32> -> vector<16x64xf32>
    %c0_3 = arith.constant 0 : index
    %c0_4 = arith.constant 0 : index
    %4 = vector.load %arg3[%c0_3, %c0_4] : memref<1x64xf32, #tpu.memory_space<vmem>>, vector<1x64xf32>
    %5 = vector.broadcast %4 : vector<1x64xf32> to vector<16x64xf32>
    %6 = arith.addf %3, %5 : vector<16x64xf32>
    %7 = arith.truncf %6 : vector<16x64xf32> to vector<16x64xbf16>
    %c0_5 = arith.constant 0 : index
    %c0_6 = arith.constant 0 : index
    %8 = vector.load %arg4[%c0_5, %c0_6] : memref<16x64xbf16, #tpu.memory_space<vmem>>, vector<16x64xbf16>
    tpu.vector_store %arg4[%c0_5, %c0_6], %7 {strides = array<i32>} : memref<16x64xbf16, #tpu.memory_space<vmem>>, vector<16x64xbf16>,
    return
  }
  func.func @transform_0(%arg0: i32) -> (i32, i32) {
    %c0_i32 = arith.constant 0 : i32
    %c0_i32_0 = arith.constant 0 : i32
    return %arg0, %c0_i32 : i32, i32
  }
  func.func @transform_1(%arg0: i32) -> (i32, i32) {
    %c0_i32 = arith.constant 0 : i32
    %c0_i32_0 = arith.constant 0 : i32
    %c0_i32_1 = arith.constant 0 : i32
    return %c0_i32, %c0_i32_0 : i32, i32
  }
  func.func @transform_2(%arg0: i32) -> (i32, i32) {
    %c0_i32 = arith.constant 0 : i32
    %c0_i32_0 = arith.constant 0 : i32
    %c0_i32_1 = arith.constant 0 : i32
    return %c0_i32, %c0_i32_0 : i32, i32
  }
  func.func @transform_3(%arg0: i32) -> (i32, i32) {
    %c0_i32 = arith.constant 0 : i32
    %c0_i32_0 = arith.constant 0 : i32
    return %arg0, %c0_i32 : i32, i32
  }
}

module attributes {stable_mosaic.version = 11 : i64} {
  func.func @_ln_qkv_kernel(%arg0: i32, %arg1: memref<16x32xf32, #tpu.memory_space<vmem>>, %arg2: memref<1x32xf32, #tpu.memory_space<vmem>>, %arg3: memref<1x32xf32, #tpu.memory_space<vmem>>, %arg4: memref<32x96xbf16, #tpu.memory_space<vmem>>, %arg5: memref<1x96xf32, #tpu.memory_space<vmem>>, %arg6: memref<16x32xbf16, #tpu.memory_space<vmem>>, %arg7: memref<16x64xbf16, #tpu.memory_space<vmem>>) attributes {dimension_semantics = [#tpu.dimension_semantics<parallel>], iteration_bounds = array<i64: 1>, scalar_prefetch = 0 : i64, scratch_operands = 0 : i64, tpu.core_type = #tpu.core_type<tc>, window_params = [{transform_indices = @transform_0, window_bounds = array<i64: 16, 32>}, {pipeline_mode = #tpu.pipeline_mode<synchronous>, transform_indices = @transform_1, window_bounds = array<i64: 1, 32>}, {pipeline_mode = #tpu.pipeline_mode<synchronous>, transform_indices = @transform_2, window_bounds = array<i64: 1, 32>}, {pipeline_mode = #tpu.pipeline_mode<synchronous>, transform_indices = @transform_3, window_bounds = array<i64: 32, 96>}, {pipeline_mode = #tpu.pipeline_mode<synchronous>, transform_indices = @transform_4, window_bounds = array<i64: 1, 96>}, {transform_indices = @transform_5, window_bounds = array<i64: 16, 32>}, {transform_indices = @transform_6, window_bounds = array<i64: 16, 64>}]} {
    %c0 = arith.constant 0 : index
    %c0_0 = arith.constant 0 : index
    %0 = vector.load %arg1[%c0, %c0_0] : memref<16x32xf32, #tpu.memory_space<vmem>>, vector<16x32xf32>
    %c0_1 = arith.constant 0 : index
    %c0_2 = arith.constant 0 : index
    %1 = vector.load %arg2[%c0_1, %c0_2] : memref<1x32xf32, #tpu.memory_space<vmem>>, vector<1x32xf32>
    %c0_3 = arith.constant 0 : index
    %c0_4 = arith.constant 0 : index
    %2 = vector.load %arg3[%c0_3, %c0_4] : memref<1x32xf32, #tpu.memory_space<vmem>>, vector<1x32xf32>
    %cst = arith.constant dense<0.000000e+00> : vector<16xf32>
    %3 = vector.multi_reduction <add>, %0, %cst [1] : vector<16x32xf32> to vector<16xf32>
    %4 = vector.shape_cast %3 : vector<16xf32> to vector<16x1xf32>
    %cst_5 = arith.constant 3.200000e+01 : f32
    %5 = vector.broadcast %cst_5 : f32 to vector<16x1xf32>
    %6 = arith.divf %4, %5 : vector<16x1xf32>
    %7 = vector.broadcast %6 : vector<16x1xf32> to vector<16x32xf32>
    %8 = arith.subf %0, %7 : vector<16x32xf32>
    %9 = arith.mulf %8, %8 : vector<16x32xf32>
    %cst_6 = arith.constant dense<0.000000e+00> : vector<16xf32>
    %10 = vector.multi_reduction <add>, %9, %cst_6 [1] : vector<16x32xf32> to vector<16xf32>
    %11 = vector.shape_cast %10 : vector<16xf32> to vector<16x1xf32>
    %cst_7 = arith.constant 3.200000e+01 : f32
    %12 = vector.broadcast %cst_7 : f32 to vector<16x1xf32>
    %13 = arith.divf %11, %12 : vector<16x1xf32>
    %14 = vector.broadcast %6 : vector<16x1xf32> to vector<16x32xf32>
    %15 = arith.subf %0, %14 : vector<16x32xf32>
    %cst_8 = arith.constant 9.99999974E-6 : f32
    %16 = vector.broadcast %cst_8 : f32 to vector<16x1xf32>
    %17 = arith.addf %13, %16 : vector<16x1xf32>
    %18 = math.rsqrt %17 : vector<16x1xf32>
    %19 = vector.broadcast %18 : vector<16x1xf32> to vector<16x32xf32>
    %20 = arith.mulf %15, %19 : vector<16x32xf32>
    %21 = vector.broadcast %1 : vector<1x32xf32> to vector<16x32xf32>
    %22 = arith.mulf %20, %21 : vector<16x32xf32>
    %23 = vector.broadcast %2 : vector<1x32xf32> to vector<16x32xf32>
    %24 = arith.addf %22, %23 : vector<16x32xf32>
    %25 = arith.truncf %24 : vector<16x32xf32> to vector<16x32xbf16>
    %c0_9 = arith.constant 0 : index
    %c0_10 = arith.constant 0 : index
    %26 = vector.load %arg4[%c0_9, %c0_10] : memref<32x96xbf16, #tpu.memory_space<vmem>>, vector<32x96xbf16>
    %cst_11 = arith.constant dense<0.000000e+00> : vector<16x96xf32>
    %27 = tpu.matmul %25, %26, %cst_11 {dimension_numbers = #tpu.dot_dimension_numbers<[1], [0], [0], [1], [0, 0, 1, 1], [], []>} : vector<16x32xbf16>, vector<32x96xbf16>, vector<16x96xf32> -> vector<16x96xf32>
    %c0_12 = arith.constant 0 : index
    %c0_13 = arith.constant 0 : index
    %28 = vector.load %arg5[%c0_12, %c0_13] : memref<1x96xf32, #tpu.memory_space<vmem>>, vector<1x96xf32>
    %29 = vector.broadcast %28 : vector<1x96xf32> to vector<16x96xf32>
    %30 = arith.addf %27, %29 : vector<16x96xf32>
    %31 = vector.extract_strided_slice %30 {offsets = [0, 0], sizes = [16, 32], strides = [1, 1]} : vector<16x96xf32> to vector<16x32xf32>
    %32 = arith.truncf %31 : vector<16x32xf32> to vector<16x32xbf16>
    %c0_14 = arith.constant 0 : index
    %c0_15 = arith.constant 0 : index
    %33 = vector.load %arg6[%c0_14, %c0_15] : memref<16x32xbf16, #tpu.memory_space<vmem>>, vector<16x32xbf16>
    tpu.vector_store %arg6[%c0_14, %c0_15], %32 {strides = array<i32>} : memref<16x32xbf16, #tpu.memory_space<vmem>>, vector<16x32xbf16>,
    %34 = vector.extract_strided_slice %30 {offsets = [0, 32], sizes = [16, 64], strides = [1, 1]} : vector<16x96xf32> to vector<16x64xf32>
    %35 = arith.truncf %34 : vector<16x64xf32> to vector<16x64xbf16>
    %c0_16 = arith.constant 0 : index
    %c0_17 = arith.constant 0 : index
    %36 = vector.load %arg7[%c0_16, %c0_17] : memref<16x64xbf16, #tpu.memory_space<vmem>>, vector<16x64xbf16>
    tpu.vector_store %arg7[%c0_16, %c0_17], %35 {strides = array<i32>} : memref<16x64xbf16, #tpu.memory_space<vmem>>, vector<16x64xbf16>,
    return
  }
  func.func @transform_0(%arg0: i32) -> (i32, i32) {
    %c0_i32 = arith.constant 0 : i32
    %c0_i32_0 = arith.constant 0 : i32
    return %arg0, %c0_i32 : i32, i32
  }
  func.func @transform_1(%arg0: i32) -> (i32, i32) {
    %c0_i32 = arith.constant 0 : i32
    %c0_i32_0 = arith.constant 0 : i32
    %c0_i32_1 = arith.constant 0 : i32
    return %c0_i32, %c0_i32_0 : i32, i32
  }
  func.func @transform_2(%arg0: i32) -> (i32, i32) {
    %c0_i32 = arith.constant 0 : i32
    %c0_i32_0 = arith.constant 0 : i32
    %c0_i32_1 = arith.constant 0 : i32
    return %c0_i32, %c0_i32_0 : i32, i32
  }
  func.func @transform_3(%arg0: i32) -> (i32, i32) {
    %c0_i32 = arith.constant 0 : i32
    %c0_i32_0 = arith.constant 0 : i32
    %c0_i32_1 = arith.constant 0 : i32
    return %c0_i32, %c0_i32_0 : i32, i32
  }
  func.func @transform_4(%arg0: i32) -> (i32, i32) {
    %c0_i32 = arith.constant 0 : i32
    %c0_i32_0 = arith.constant 0 : i32
    %c0_i32_1 = arith.constant 0 : i32
    return %c0_i32, %c0_i32_0 : i32, i32
  }
  func.func @transform_5(%arg0: i32) -> (i32, i32) {
    %c0_i32 = arith.constant 0 : i32
    %c0_i32_0 = arith.constant 0 : i32
    return %arg0, %c0_i32 : i32, i32
  }
  func.func @transform_6(%arg0: i32) -> (i32, i32) {
    %c0_i32 = arith.constant 0 : i32
    %c0_i32_0 = arith.constant 0 : i32
    return %arg0, %c0_i32 : i32, i32
  }
}

module attributes {stable_mosaic.version = 11 : i64} {
  func.func @_attn_kernel(%arg0: i32, %arg1: i32, %arg2: memref<1x8x32xbf16, #tpu.memory_space<vmem>>, %arg3: memref<1x8x64xbf16, #tpu.memory_space<vmem>>, %arg4: memref<1x8x8xbf16, #tpu.memory_space<vmem>>, %arg5: memref<32x32xbf16, #tpu.memory_space<vmem>>, %arg6: memref<1x32xf32, #tpu.memory_space<vmem>>, %arg7: memref<1x8x32xf32, #tpu.memory_space<vmem>>, %arg8: memref<1x8x32xf32, #tpu.memory_space<vmem>>, %arg9: memref<8x32xbf16, #tpu.memory_space<vmem>>) attributes {dimension_semantics = [#tpu.dimension_semantics<parallel>, #tpu.dimension_semantics<parallel>], iteration_bounds = array<i64: 2, 1>, scalar_prefetch = 0 : i64, scratch_operands = 1 : i64, tpu.core_type = #tpu.core_type<tc>, window_params = [{transform_indices = @transform_0, window_bounds = array<i64: 1, 8, 32>}, {transform_indices = @transform_1, window_bounds = array<i64: 1, 8, 64>}, {transform_indices = @transform_2, window_bounds = array<i64: 1, 8, 8>}, {pipeline_mode = #tpu.pipeline_mode<synchronous>, transform_indices = @transform_3, window_bounds = array<i64: 32, 32>}, {pipeline_mode = #tpu.pipeline_mode<synchronous>, transform_indices = @transform_4, window_bounds = array<i64: 1, 32>}, {transform_indices = @transform_5, window_bounds = array<i64: 1, 8, 32>}, {transform_indices = @transform_6, window_bounds = array<i64: 1, 8, 32>}]} {
    %c0 = arith.constant 0 : index
    %c0_0 = arith.constant 0 : index
    %c0_1 = arith.constant 0 : index
    %0 = vector.load %arg4[%c0, %c0_0, %c0_1] : memref<1x8x8xbf16, #tpu.memory_space<vmem>>, vector<1x8x8xbf16>
    %1 = vector.shape_cast %0 : vector<1x8x8xbf16> to vector<8x8xbf16>
    %2 = arith.extf %1 : vector<8x8xbf16> to vector<8x8xf32>
    %c0_2 = arith.constant 0 : index
    %c0_3 = arith.constant 0 : index
    %c0_4 = arith.constant 0 : index
    %3 = vector.load %arg2[%c0_2, %c0_3, %c0_4] : memref<1x8x32xbf16, #tpu.memory_space<vmem>>, vector<1x8x8xbf16>
    %4 = vector.shape_cast %3 : vector<1x8x8xbf16> to vector<8x8xbf16>
    %c0_5 = arith.constant 0 : index
    %c0_6 = arith.constant 0 : index
    %c0_7 = arith.constant 0 : index
    %5 = vector.load %arg3[%c0_5, %c0_6, %c0_7] : memref<1x8x64xbf16, #tpu.memory_space<vmem>>, vector<1x8x8xbf16>
    %6 = vector.shape_cast %5 : vector<1x8x8xbf16> to vector<8x8xbf16>
    %c0_8 = arith.constant 0 : index
    %c0_9 = arith.constant 0 : index
    %c32 = arith.constant 32 : index
    %7 = vector.load %arg3[%c0_8, %c0_9, %c32] : memref<1x8x64xbf16, #tpu.memory_space<vmem>>, vector<1x8x8xbf16>
    %8 = vector.shape_cast %7 : vector<1x8x8xbf16> to vector<8x8xbf16>
    %cst = arith.constant dense<0.000000e+00> : vector<8x8xf32>
    %9 = tpu.matmul %4, %6, %cst {dimension_numbers = #tpu.dot_dimension_numbers<[1], [1], [0], [0], [0, 0, 1, 0], [], []>} : vector<8x8xbf16>, vector<8x8xbf16>, vector<8x8xf32> -> vector<8x8xf32>
    %cst_10 = arith.constant 0.353553385 : f32
    %10 = vector.broadcast %cst_10 : f32 to vector<8x8xf32>
    %11 = arith.mulf %9, %10 : vector<8x8xf32>
    %12 = arith.addf %11, %2 : vector<8x8xf32>
    %cst_11 = arith.constant dense<0xFF800000> : vector<8xf32>
    %13 = vector.multi_reduction <maximumf>, %12, %cst_11 [1] : vector<8x8xf32> to vector<8xf32>
    %14 = vector.shape_cast %13 : vector<8xf32> to vector<8x1xf32>
    %15 = vector.broadcast %14 : vector<8x1xf32> to vector<8x8xf32>
    %16 = arith.subf %12, %15 : vector<8x8xf32>
    %17 = math.exp %16 : vector<8x8xf32>
    %cst_12 = arith.constant dense<0.000000e+00> : vector<8xf32>
    %18 = vector.multi_reduction <add>, %17, %cst_12 [1] : vector<8x8xf32> to vector<8xf32>
    %19 = vector.shape_cast %18 : vector<8xf32> to vector<8x1xf32>
    %20 = tpu.reciprocal %19 {approx = true} : vector<8x1xf32> -> vector<8x1xf32>
    %21 = vector.broadcast %20 : vector<8x1xf32> to vector<8x8xf32>
    %22 = arith.mulf %17, %21 : vector<8x8xf32>
    %23 = arith.truncf %22 : vector<8x8xf32> to vector<8x8xbf16>
    %cst_13 = arith.constant dense<0.000000e+00> : vector<8x8xf32>
    %24 = tpu.matmul %23, %8, %cst_13 {dimension_numbers = #tpu.dot_dimension_numbers<[1], [0], [0], [1], [0, 0, 1, 1], [], []>} : vector<8x8xbf16>, vector<8x8xbf16>, vector<8x8xf32> -> vector<8x8xf32>
    %25 = arith.truncf %24 : vector<8x8xf32> to vector<8x8xbf16>
    %c0_14 = arith.constant 0 : index
    %c0_15 = arith.constant 0 : index
    %26 = vector.load %arg9[%c0_14, %c0_15] : memref<8x32xbf16, #tpu.memory_space<vmem>>, vector<8x8xbf16>
    tpu.vector_store %arg9[%c0_14, %c0_15], %25 {strides = array<i32>} : memref<8x32xbf16, #tpu.memory_space<vmem>>, vector<8x8xbf16>,
    %c0_16 = arith.constant 0 : index
    %c0_17 = arith.constant 0 : index
    %c8 = arith.constant 8 : index
    %27 = vector.load %arg2[%c0_16, %c0_17, %c8] : memref<1x8x32xbf16, #tpu.memory_space<vmem>>, vector<1x8x8xbf16>
    %28 = vector.shape_cast %27 : vector<1x8x8xbf16> to vector<8x8xbf16>
    %c0_18 = arith.constant 0 : index
    %c0_19 = arith.constant 0 : index
    %c8_20 = arith.constant 8 : index
    %29 = vector.load %arg3[%c0_18, %c0_19, %c8_20] : memref<1x8x64xbf16, #tpu.memory_space<vmem>>, vector<1x8x8xbf16>
    %30 = vector.shape_cast %29 : vector<1x8x8xbf16> to vector<8x8xbf16>
    %c0_21 = arith.constant 0 : index
    %c0_22 = arith.constant 0 : index
    %c40 = arith.constant 40 : index
    %31 = vector.load %arg3[%c0_21, %c0_22, %c40] : memref<1x8x64xbf16, #tpu.memory_space<vmem>>, vector<1x8x8xbf16>
    %32 = vector.shape_cast %31 : vector<1x8x8xbf16> to vector<8x8xbf16>
    %cst_23 = arith.constant dense<0.000000e+00> : vector<8x8xf32>
    %33 = tpu.matmul %28, %30, %cst_23 {dimension_numbers = #tpu.dot_dimension_numbers<[1], [1], [0], [0], [0, 0, 1, 0], [], []>} : vector<8x8xbf16>, vector<8x8xbf16>, vector<8x8xf32> -> vector<8x8xf32>
    %cst_24 = arith.constant 0.353553385 : f32
    %34 = vector.broadcast %cst_24 : f32 to vector<8x8xf32>
    %35 = arith.mulf %33, %34 : vector<8x8xf32>
    %36 = arith.addf %35, %2 : vector<8x8xf32>
    %cst_25 = arith.constant dense<0xFF800000> : vector<8xf32>
    %37 = vector.multi_reduction <maximumf>, %36, %cst_25 [1] : vector<8x8xf32> to vector<8xf32>
    %38 = vector.shape_cast %37 : vector<8xf32> to vector<8x1xf32>
    %39 = vector.broadcast %38 : vector<8x1xf32> to vector<8x8xf32>
    %40 = arith.subf %36, %39 : vector<8x8xf32>
    %41 = math.exp %40 : vector<8x8xf32>
    %cst_26 = arith.constant dense<0.000000e+00> : vector<8xf32>
    %42 = vector.multi_reduction <add>, %41, %cst_26 [1] : vector<8x8xf32> to vector<8xf32>
    %43 = vector.shape_cast %42 : vector<8xf32> to vector<8x1xf32>
    %44 = tpu.reciprocal %43 {approx = true} : vector<8x1xf32> -> vector<8x1xf32>
    %45 = vector.broadcast %44 : vector<8x1xf32> to vector<8x8xf32>
    %46 = arith.mulf %41, %45 : vector<8x8xf32>
    %47 = arith.truncf %46 : vector<8x8xf32> to vector<8x8xbf16>
    %cst_27 = arith.constant dense<0.000000e+00> : vector<8x8xf32>
    %48 = tpu.matmul %47, %32, %cst_27 {dimension_numbers = #tpu.dot_dimension_numbers<[1], [0], [0], [1], [0, 0, 1, 1], [], []>} : vector<8x8xbf16>, vector<8x8xbf16>, vector<8x8xf32> -> vector<8x8xf32>
    %49 = arith.truncf %48 : vector<8x8xf32> to vector<8x8xbf16>
    %c0_28 = arith.constant 0 : index
    %c8_29 = arith.constant 8 : index
    %50 = vector.load %arg9[%c0_28, %c8_29] : memref<8x32xbf16, #tpu.memory_space<vmem>>, vector<8x8xbf16>
    tpu.vector_store %arg9[%c0_28, %c8_29], %49 {strides = array<i32>} : memref<8x32xbf16, #tpu.memory_space<vmem>>, vector<8x8xbf16>,
    %c0_30 = arith.constant 0 : index
    %c0_31 = arith.constant 0 : index
    %c16 = arith.constant 16 : index
    %51 = vector.load %arg2[%c0_30, %c0_31, %c16] : memref<1x8x32xbf16, #tpu.memory_space<vmem>>, vector<1x8x8xbf16>
    %52 = vector.shape_cast %51 : vector<1x8x8xbf16> to vector<8x8xbf16>
    %c0_32 = arith.constant 0 : index
    %c0_33 = arith.constant 0 : index
    %c16_34 = arith.constant 16 : index
    %53 = vector.load %arg3[%c0_32, %c0_33, %c16_34] : memref<1x8x64xbf16, #tpu.memory_space<vmem>>, vector<1x8x8xbf16>
    %54 = vector.shape_cast %53 : vector<1x8x8xbf16> to vector<8x8xbf16>
    %c0_35 = arith.constant 0 : index
    %c0_36 = arith.constant 0 : index
    %c48 = arith.constant 48 : index
    %55 = vector.load %arg3[%c0_35, %c0_36, %c48] : memref<1x8x64xbf16, #tpu.memory_space<vmem>>, vector<1x8x8xbf16>
    %56 = vector.shape_cast %55 : vector<1x8x8xbf16> to vector<8x8xbf16>
    %cst_37 = arith.constant dense<0.000000e+00> : vector<8x8xf32>
    %57 = tpu.matmul %52, %54, %cst_37 {dimension_numbers = #tpu.dot_dimension_numbers<[1], [1], [0], [0], [0, 0, 1, 0], [], []>} : vector<8x8xbf16>, vector<8x8xbf16>, vector<8x8xf32> -> vector<8x8xf32>
    %cst_38 = arith.constant 0.353553385 : f32
    %58 = vector.broadcast %cst_38 : f32 to vector<8x8xf32>
    %59 = arith.mulf %57, %58 : vector<8x8xf32>
    %60 = arith.addf %59, %2 : vector<8x8xf32>
    %cst_39 = arith.constant dense<0xFF800000> : vector<8xf32>
    %61 = vector.multi_reduction <maximumf>, %60, %cst_39 [1] : vector<8x8xf32> to vector<8xf32>
    %62 = vector.shape_cast %61 : vector<8xf32> to vector<8x1xf32>
    %63 = vector.broadcast %62 : vector<8x1xf32> to vector<8x8xf32>
    %64 = arith.subf %60, %63 : vector<8x8xf32>
    %65 = math.exp %64 : vector<8x8xf32>
    %cst_40 = arith.constant dense<0.000000e+00> : vector<8xf32>
    %66 = vector.multi_reduction <add>, %65, %cst_40 [1] : vector<8x8xf32> to vector<8xf32>
    %67 = vector.shape_cast %66 : vector<8xf32> to vector<8x1xf32>
    %68 = tpu.reciprocal %67 {approx = true} : vector<8x1xf32> -> vector<8x1xf32>
    %69 = vector.broadcast %68 : vector<8x1xf32> to vector<8x8xf32>
    %70 = arith.mulf %65, %69 : vector<8x8xf32>
    %71 = arith.truncf %70 : vector<8x8xf32> to vector<8x8xbf16>
    %cst_41 = arith.constant dense<0.000000e+00> : vector<8x8xf32>
    %72 = tpu.matmul %71, %56, %cst_41 {dimension_numbers = #tpu.dot_dimension_numbers<[1], [0], [0], [1], [0, 0, 1, 1], [], []>} : vector<8x8xbf16>, vector<8x8xbf16>, vector<8x8xf32> -> vector<8x8xf32>
    %73 = arith.truncf %72 : vector<8x8xf32> to vector<8x8xbf16>
    %c0_42 = arith.constant 0 : index
    %c16_43 = arith.constant 16 : index
    %74 = vector.load %arg9[%c0_42, %c16_43] : memref<8x32xbf16, #tpu.memory_space<vmem>>, vector<8x8xbf16>
    tpu.vector_store %arg9[%c0_42, %c16_43], %73 {strides = array<i32>} : memref<8x32xbf16, #tpu.memory_space<vmem>>, vector<8x8xbf16>,
    %c0_44 = arith.constant 0 : index
    %c0_45 = arith.constant 0 : index
    %c24 = arith.constant 24 : index
    %75 = vector.load %arg2[%c0_44, %c0_45, %c24] : memref<1x8x32xbf16, #tpu.memory_space<vmem>>, vector<1x8x8xbf16>
    %76 = vector.shape_cast %75 : vector<1x8x8xbf16> to vector<8x8xbf16>
    %c0_46 = arith.constant 0 : index
    %c0_47 = arith.constant 0 : index
    %c24_48 = arith.constant 24 : index
    %77 = vector.load %arg3[%c0_46, %c0_47, %c24_48] : memref<1x8x64xbf16, #tpu.memory_space<vmem>>, vector<1x8x8xbf16>
    %78 = vector.shape_cast %77 : vector<1x8x8xbf16> to vector<8x8xbf16>
    %c0_49 = arith.constant 0 : index
    %c0_50 = arith.constant 0 : index
    %c56 = arith.constant 56 : index
    %79 = vector.load %arg3[%c0_49, %c0_50, %c56] : memref<1x8x64xbf16, #tpu.memory_space<vmem>>, vector<1x8x8xbf16>
    %80 = vector.shape_cast %79 : vector<1x8x8xbf16> to vector<8x8xbf16>
    %cst_51 = arith.constant dense<0.000000e+00> : vector<8x8xf32>
    %81 = tpu.matmul %76, %78, %cst_51 {dimension_numbers = #tpu.dot_dimension_numbers<[1], [1], [0], [0], [0, 0, 1, 0], [], []>} : vector<8x8xbf16>, vector<8x8xbf16>, vector<8x8xf32> -> vector<8x8xf32>
    %cst_52 = arith.constant 0.353553385 : f32
    %82 = vector.broadcast %cst_52 : f32 to vector<8x8xf32>
    %83 = arith.mulf %81, %82 : vector<8x8xf32>
    %84 = arith.addf %83, %2 : vector<8x8xf32>
    %cst_53 = arith.constant dense<0xFF800000> : vector<8xf32>
    %85 = vector.multi_reduction <maximumf>, %84, %cst_53 [1] : vector<8x8xf32> to vector<8xf32>
    %86 = vector.shape_cast %85 : vector<8xf32> to vector<8x1xf32>
    %87 = vector.broadcast %86 : vector<8x1xf32> to vector<8x8xf32>
    %88 = arith.subf %84, %87 : vector<8x8xf32>
    %89 = math.exp %88 : vector<8x8xf32>
    %cst_54 = arith.constant dense<0.000000e+00> : vector<8xf32>
    %90 = vector.multi_reduction <add>, %89, %cst_54 [1] : vector<8x8xf32> to vector<8xf32>
    %91 = vector.shape_cast %90 : vector<8xf32> to vector<8x1xf32>
    %92 = tpu.reciprocal %91 {approx = true} : vector<8x1xf32> -> vector<8x1xf32>
    %93 = vector.broadcast %92 : vector<8x1xf32> to vector<8x8xf32>
    %94 = arith.mulf %89, %93 : vector<8x8xf32>
    %95 = arith.truncf %94 : vector<8x8xf32> to vector<8x8xbf16>
    %cst_55 = arith.constant dense<0.000000e+00> : vector<8x8xf32>
    %96 = tpu.matmul %95, %80, %cst_55 {dimension_numbers = #tpu.dot_dimension_numbers<[1], [0], [0], [1], [0, 0, 1, 1], [], []>} : vector<8x8xbf16>, vector<8x8xbf16>, vector<8x8xf32> -> vector<8x8xf32>
    %97 = arith.truncf %96 : vector<8x8xf32> to vector<8x8xbf16>
    %c0_56 = arith.constant 0 : index
    %c24_57 = arith.constant 24 : index
    %98 = vector.load %arg9[%c0_56, %c24_57] : memref<8x32xbf16, #tpu.memory_space<vmem>>, vector<8x8xbf16>
    tpu.vector_store %arg9[%c0_56, %c24_57], %97 {strides = array<i32>} : memref<8x32xbf16, #tpu.memory_space<vmem>>, vector<8x8xbf16>,
    %c0_58 = arith.constant 0 : index
    %c0_59 = arith.constant 0 : index
    %99 = vector.load %arg9[%c0_58, %c0_59] : memref<8x32xbf16, #tpu.memory_space<vmem>>, vector<8x32xbf16>
    %c0_60 = arith.constant 0 : index
    %c0_61 = arith.constant 0 : index
    %100 = vector.load %arg5[%c0_60, %c0_61] : memref<32x32xbf16, #tpu.memory_space<vmem>>, vector<32x32xbf16>
    %cst_62 = arith.constant dense<0.000000e+00> : vector<8x32xf32>
    %101 = tpu.matmul %99, %100, %cst_62 {dimension_numbers = #tpu.dot_dimension_numbers<[1], [0], [0], [1], [0, 0, 1, 1], [], []>} : vector<8x32xbf16>, vector<32x32xbf16>, vector<8x32xf32> -> vector<8x32xf32>
    %c0_63 = arith.constant 0 : index
    %c0_64 = arith.constant 0 : index
    %c0_65 = arith.constant 0 : index
    %102 = vector.load %arg7[%c0_63, %c0_64, %c0_65] : memref<1x8x32xf32, #tpu.memory_space<vmem>>, vector<1x8x32xf32>
    %103 = vector.shape_cast %102 : vector<1x8x32xf32> to vector<8x32xf32>
    %104 = arith.addf %103, %101 : vector<8x32xf32>
    %c0_66 = arith.constant 0 : index
    %c0_67 = arith.constant 0 : index
    %105 = vector.load %arg6[%c0_66, %c0_67] : memref<1x32xf32, #tpu.memory_space<vmem>>, vector<1x32xf32>
    %106 = vector.broadcast %105 : vector<1x32xf32> to vector<8x32xf32>
    %107 = arith.addf %104, %106 : vector<8x32xf32>
    %c0_68 = arith.constant 0 : index
    %c0_69 = arith.constant 0 : index
    %c0_70 = arith.constant 0 : index
    %108 = vector.load %arg8[%c0_68, %c0_69, %c0_70] : memref<1x8x32xf32, #tpu.memory_space<vmem>>, vector<1x8x32xf32>
    %109 = vector.shape_cast %108 : vector<1x8x32xf32> to vector<8x32xf32>
    %110 = vector.shape_cast %107 : vector<8x32xf32> to vector<1x8x32xf32>
    tpu.vector_store %arg8[%c0_68, %c0_69, %c0_70], %110 {strides = array<i32>} : memref<1x8x32xf32, #tpu.memory_space<vmem>>, vector<1x8x32xf32>,
    return
  }
  func.func @transform_0(%arg0: i32, %arg1: i32) -> (i32, i32, i32) {
    %c0_i32 = arith.constant 0 : i32
    %c0_i32_0 = arith.constant 0 : i32
    return %arg0, %arg1, %c0_i32 : i32, i32, i32
  }
  func.func @transform_1(%arg0: i32, %arg1: i32) -> (i32, i32, i32) {
    %c0_i32 = arith.constant 0 : i32
    %c0_i32_0 = arith.constant 0 : i32
    %c0_i32_1 = arith.constant 0 : i32
    return %arg0, %c0_i32, %c0_i32_0 : i32, i32, i32
  }
  func.func @transform_2(%arg0: i32, %arg1: i32) -> (i32, i32, i32) {
    %c0_i32 = arith.constant 0 : i32
    %c0_i32_0 = arith.constant 0 : i32
    return %arg0, %arg1, %c0_i32 : i32, i32, i32
  }
  func.func @transform_3(%arg0: i32, %arg1: i32) -> (i32, i32) {
    %c0_i32 = arith.constant 0 : i32
    %c0_i32_0 = arith.constant 0 : i32
    %c0_i32_1 = arith.constant 0 : i32
    return %c0_i32, %c0_i32_0 : i32, i32
  }
  func.func @transform_4(%arg0: i32, %arg1: i32) -> (i32, i32) {
    %c0_i32 = arith.constant 0 : i32
    %c0_i32_0 = arith.constant 0 : i32
    %c0_i32_1 = arith.constant 0 : i32
    return %c0_i32, %c0_i32_0 : i32, i32
  }
  func.func @transform_5(%arg0: i32, %arg1: i32) -> (i32, i32, i32) {
    %c0_i32 = arith.constant 0 : i32
    %c0_i32_0 = arith.constant 0 : i32
    return %arg0, %arg1, %c0_i32 : i32, i32, i32
  }
  func.func @transform_6(%arg0: i32, %arg1: i32) -> (i32, i32, i32) {
    %c0_i32 = arith.constant 0 : i32
    %c0_i32_0 = arith.constant 0 : i32
    return %arg0, %arg1, %c0_i32 : i32, i32, i32
  }
}

module attributes {stable_mosaic.version = 11 : i64} {
  func.func @_ln_ffn_kernel(%arg0: i32, %arg1: i32, %arg2: memref<16x32xf32, #tpu.memory_space<vmem>>, %arg3: memref<1x32xf32, #tpu.memory_space<vmem>>, %arg4: memref<1x32xf32, #tpu.memory_space<vmem>>, %arg5: memref<32x128xbf16, #tpu.memory_space<vmem>>, %arg6: memref<1x128xf32, #tpu.memory_space<vmem>>, %arg7: memref<128x32xbf16, #tpu.memory_space<vmem>>, %arg8: memref<1x32xf32, #tpu.memory_space<vmem>>, %arg9: memref<16x32xf32, #tpu.memory_space<vmem>>, %arg10: memref<16x32xf32, #tpu.memory_space<vmem>>, %arg11: memref<16x32xbf16, #tpu.memory_space<vmem>>) attributes {dimension_semantics = [#tpu.dimension_semantics<parallel>, #tpu.dimension_semantics<arbitrary>], iteration_bounds = array<i64: 1, 1>, scalar_prefetch = 0 : i64, scratch_operands = 2 : i64, tpu.core_type = #tpu.core_type<tc>, window_params = [{transform_indices = @transform_0, window_bounds = array<i64: 16, 32>}, {pipeline_mode = #tpu.pipeline_mode<synchronous>, transform_indices = @transform_1, window_bounds = array<i64: 1, 32>}, {pipeline_mode = #tpu.pipeline_mode<synchronous>, transform_indices = @transform_2, window_bounds = array<i64: 1, 32>}, {transform_indices = @transform_3, window_bounds = array<i64: 32, 128>}, {transform_indices = @transform_4, window_bounds = array<i64: 1, 128>}, {transform_indices = @transform_5, window_bounds = array<i64: 128, 32>}, {pipeline_mode = #tpu.pipeline_mode<synchronous>, transform_indices = @transform_6, window_bounds = array<i64: 1, 32>}, {transform_indices = @transform_7, window_bounds = array<i64: 16, 32>}]} {
    %c0_i32 = arith.constant 0 : i32
    %0 = arith.cmpi eq, %arg1, %c0_i32 : i32
    %1 = arith.extui %0 : i1 to i32
    %c0_i32_0 = arith.constant 0 : i32
    %2 = arith.cmpi ne, %1, %c0_i32_0 : i32
    scf.if %2 {
      %c0_19 = arith.constant 0 : index
      %c0_20 = arith.constant 0 : index
      %31 = vector.load %arg2[%c0_19, %c0_20] : memref<16x32xf32, #tpu.memory_space<vmem>>, vector<16x32xf32>
      %c0_21 = arith.constant 0 : index
      %c0_22 = arith.constant 0 : index
      %32 = vector.load %arg3[%c0_21, %c0_22] : memref<1x32xf32, #tpu.memory_space<vmem>>, vector<1x32xf32>
      %c0_23 = arith.constant 0 : index
      %c0_24 = arith.constant 0 : index
      %33 = vector.load %arg4[%c0_23, %c0_24] : memref<1x32xf32, #tpu.memory_space<vmem>>, vector<1x32xf32>
      %cst_25 = arith.constant dense<0.000000e+00> : vector<16xf32>
      %34 = vector.multi_reduction <add>, %31, %cst_25 [1] : vector<16x32xf32> to vector<16xf32>
      %35 = vector.shape_cast %34 : vector<16xf32> to vector<16x1xf32>
      %cst_26 = arith.constant 3.200000e+01 : f32
      %36 = vector.broadcast %cst_26 : f32 to vector<16x1xf32>
      %37 = arith.divf %35, %36 : vector<16x1xf32>
      %38 = vector.broadcast %37 : vector<16x1xf32> to vector<16x32xf32>
      %39 = arith.subf %31, %38 : vector<16x32xf32>
      %40 = arith.mulf %39, %39 : vector<16x32xf32>
      %cst_27 = arith.constant dense<0.000000e+00> : vector<16xf32>
      %41 = vector.multi_reduction <add>, %40, %cst_27 [1] : vector<16x32xf32> to vector<16xf32>
      %42 = vector.shape_cast %41 : vector<16xf32> to vector<16x1xf32>
      %cst_28 = arith.constant 3.200000e+01 : f32
      %43 = vector.broadcast %cst_28 : f32 to vector<16x1xf32>
      %44 = arith.divf %42, %43 : vector<16x1xf32>
      %45 = vector.broadcast %37 : vector<16x1xf32> to vector<16x32xf32>
      %46 = arith.subf %31, %45 : vector<16x32xf32>
      %cst_29 = arith.constant 9.99999974E-6 : f32
      %47 = vector.broadcast %cst_29 : f32 to vector<16x1xf32>
      %48 = arith.addf %44, %47 : vector<16x1xf32>
      %49 = math.rsqrt %48 : vector<16x1xf32>
      %50 = vector.broadcast %49 : vector<16x1xf32> to vector<16x32xf32>
      %51 = arith.mulf %46, %50 : vector<16x32xf32>
      %52 = vector.broadcast %32 : vector<1x32xf32> to vector<16x32xf32>
      %53 = arith.mulf %51, %52 : vector<16x32xf32>
      %54 = vector.broadcast %33 : vector<1x32xf32> to vector<16x32xf32>
      %55 = arith.addf %53, %54 : vector<16x32xf32>
      %56 = arith.truncf %55 : vector<16x32xf32> to vector<16x32xbf16>
      %c0_30 = arith.constant 0 : index
      %c0_31 = arith.constant 0 : index
      %57 = vector.load %arg11[%c0_30, %c0_31] : memref<16x32xbf16, #tpu.memory_space<vmem>>, vector<16x32xbf16>
      tpu.vector_store %arg11[%c0_30, %c0_31], %56 {strides = array<i32>} : memref<16x32xbf16, #tpu.memory_space<vmem>>, vector<16x32xbf16>,
      %cst_32 = arith.constant 0.000000e+00 : f32
      %58 = vector.broadcast %cst_32 : f32 to vector<16x32xf32>
      %c0_33 = arith.constant 0 : index
      %c0_34 = arith.constant 0 : index
      %59 = vector.load %arg10[%c0_33, %c0_34] : memref<16x32xf32, #tpu.memory_space<vmem>>, vector<16x32xf32>
      tpu.vector_store %arg10[%c0_33, %c0_34], %58 {strides = array<i32>} : memref<16x32xf32, #tpu.memory_space<vmem>>, vector<16x32xf32>,
    } else {
    }
    %c0 = arith.constant 0 : index
    %c0_1 = arith.constant 0 : index
    %3 = vector.load %arg11[%c0, %c0_1] : memref<16x32xbf16, #tpu.memory_space<vmem>>, vector<16x32xbf16>
    %c0_2 = arith.constant 0 : index
    %c0_3 = arith.constant 0 : index
    %4 = vector.load %arg5[%c0_2, %c0_3] : memref<32x128xbf16, #tpu.memory_space<vmem>>, vector<32x128xbf16>
    %cst = arith.constant dense<0.000000e+00> : vector<16x128xf32>
    %5 = tpu.matmul %3, %4, %cst {dimension_numbers = #tpu.dot_dimension_numbers<[1], [0], [0], [1], [0, 0, 1, 1], [], []>} : vector<16x32xbf16>, vector<32x128xbf16>, vector<16x128xf32> -> vector<16x128xf32>
    %c0_4 = arith.constant 0 : index
    %c0_5 = arith.constant 0 : index
    %6 = vector.load %arg6[%c0_4, %c0_5] : memref<1x128xf32, #tpu.memory_space<vmem>>, vector<1x128xf32>
    %7 = vector.broadcast %6 : vector<1x128xf32> to vector<16x128xf32>
    %8 = arith.addf %5, %7 : vector<16x128xf32>
    %cst_6 = arith.constant 5.000000e-01 : f32
    %9 = vector.broadcast %cst_6 : f32 to vector<16x128xf32>
    %10 = arith.mulf %9, %8 : vector<16x128xf32>
    %cst_7 = arith.constant 4.471500e-02 : f32
    %11 = vector.broadcast %cst_7 : f32 to vector<16x128xf32>
    %12 = arith.mulf %11, %8 : vector<16x128xf32>
    %13 = arith.mulf %12, %8 : vector<16x128xf32>
    %14 = arith.mulf %13, %8 : vector<16x128xf32>
    %15 = arith.addf %8, %14 : vector<16x128xf32>
    %cst_8 = arith.constant 0.797884583 : f32
    %16 = vector.broadcast %cst_8 : f32 to vector<16x128xf32>
    %17 = arith.mulf %16, %15 : vector<16x128xf32>
    %18 = math.tanh %17 : vector<16x128xf32>
    %cst_9 = arith.constant 1.000000e+00 : f32
    %19 = vector.broadcast %cst_9 : f32 to vector<16x128xf32>
    %20 = arith.addf %19, %18 : vector<16x128xf32>
    %21 = arith.mulf %10, %20 : vector<16x128xf32>
    %c0_10 = arith.constant 0 : index
    %c0_11 = arith.constant 0 : index
    %22 = vector.load %arg10[%c0_10, %c0_11] : memref<16x32xf32, #tpu.memory_space<vmem>>, vector<16x32xf32>
    %23 = arith.truncf %21 : vector<16x128xf32> to vector<16x128xbf16>
    %c0_12 = arith.constant 0 : index
    %c0_13 = arith.constant 0 : index
    %24 = vector.load %arg7[%c0_12, %c0_13] : memref<128x32xbf16, #tpu.memory_space<vmem>>, vector<128x32xbf16>
    %cst_14 = arith.constant dense<0.000000e+00> : vector<16x32xf32>
    %25 = tpu.matmul %23, %24, %cst_14 {dimension_numbers = #tpu.dot_dimension_numbers<[1], [0], [0], [1], [0, 0, 1, 1], [], []>} : vector<16x128xbf16>, vector<128x32xbf16>, vector<16x32xf32> -> vector<16x32xf32>
    %26 = arith.addf %22, %25 : vector<16x32xf32>
    %c0_15 = arith.constant 0 : index
    %c0_16 = arith.constant 0 : index
    %27 = vector.load %arg10[%c0_15, %c0_16] : memref<16x32xf32, #tpu.memory_space<vmem>>, vector<16x32xf32>
    tpu.vector_store %arg10[%c0_15, %c0_16], %26 {strides = array<i32>} : memref<16x32xf32, #tpu.memory_space<vmem>>, vector<16x32xf32>,
    %c0_i32_17 = arith.constant 0 : i32
    %28 = arith.cmpi eq, %arg1, %c0_i32_17 : i32
    %29 = arith.extui %28 : i1 to i32
    %c0_i32_18 = arith.constant 0 : i32
    %30 = arith.cmpi ne, %29, %c0_i32_18 : i32
    scf.if %30 {
      %c0_19 = arith.constant 0 : index
      %c0_20 = arith.constant 0 : index
      %31 = vector.load %arg2[%c0_19, %c0_20] : memref<16x32xf32, #tpu.memory_space<vmem>>, vector<16x32xf32>
      %c0_21 = arith.constant 0 : index
      %c0_22 = arith.constant 0 : index
      %32 = vector.load %arg10[%c0_21, %c0_22] : memref<16x32xf32, #tpu.memory_space<vmem>>, vector<16x32xf32>
      %33 = arith.addf %31, %32 : vector<16x32xf32>
      %c0_23 = arith.constant 0 : index
      %c0_24 = arith.constant 0 : index
      %34 = vector.load %arg8[%c0_23, %c0_24] : memref<1x32xf32, #tpu.memory_space<vmem>>, vector<1x32xf32>
      %35 = vector.broadcast %34 : vector<1x32xf32> to vector<16x32xf32>
      %36 = arith.addf %33, %35 : vector<16x32xf32>
      %c0_25 = arith.constant 0 : index
      %c0_26 = arith.constant 0 : index
      %37 = vector.load %arg9[%c0_25, %c0_26] : memref<16x32xf32, #tpu.memory_space<vmem>>, vector<16x32xf32>
      tpu.vector_store %arg9[%c0_25, %c0_26], %36 {strides = array<i32>} : memref<16x32xf32, #tpu.memory_space<vmem>>, vector<16x32xf32>,
    } else {
    }
    return
  }
  func.func @transform_0(%arg0: i32, %arg1: i32) -> (i32, i32) {
    %c0_i32 = arith.constant 0 : i32
    %c0_i32_0 = arith.constant 0 : i32
    return %arg0, %c0_i32 : i32, i32
  }
  func.func @transform_1(%arg0: i32, %arg1: i32) -> (i32, i32) {
    %c0_i32 = arith.constant 0 : i32
    %c0_i32_0 = arith.constant 0 : i32
    %c0_i32_1 = arith.constant 0 : i32
    return %c0_i32, %c0_i32_0 : i32, i32
  }
  func.func @transform_2(%arg0: i32, %arg1: i32) -> (i32, i32) {
    %c0_i32 = arith.constant 0 : i32
    %c0_i32_0 = arith.constant 0 : i32
    %c0_i32_1 = arith.constant 0 : i32
    return %c0_i32, %c0_i32_0 : i32, i32
  }
  func.func @transform_3(%arg0: i32, %arg1: i32) -> (i32, i32) {
    %c0_i32 = arith.constant 0 : i32
    %c0_i32_0 = arith.constant 0 : i32
    return %c0_i32, %arg1 : i32, i32
  }
  func.func @transform_4(%arg0: i32, %arg1: i32) -> (i32, i32) {
    %c0_i32 = arith.constant 0 : i32
    %c0_i32_0 = arith.constant 0 : i32
    return %c0_i32, %arg1 : i32, i32
  }
  func.func @transform_5(%arg0: i32, %arg1: i32) -> (i32, i32) {
    %c0_i32 = arith.constant 0 : i32
    %c0_i32_0 = arith.constant 0 : i32
    return %arg1, %c0_i32 : i32, i32
  }
  func.func @transform_6(%arg0: i32, %arg1: i32) -> (i32, i32) {
    %c0_i32 = arith.constant 0 : i32
    %c0_i32_0 = arith.constant 0 : i32
    %c0_i32_1 = arith.constant 0 : i32
    return %c0_i32, %c0_i32_0 : i32, i32
  }
  func.func @transform_7(%arg0: i32, %arg1: i32) -> (i32, i32) {
    %c0_i32 = arith.constant 0 : i32
    %c0_i32_0 = arith.constant 0 : i32
    return %arg0, %c0_i32 : i32, i32
  }
}

module attributes {stable_mosaic.version = 11 : i64} {
  func.func @_ln_linear_kernel(%arg0: i32, %arg1: memref<16x32xf32, #tpu.memory_space<vmem>>, %arg2: memref<1x32xf32, #tpu.memory_space<vmem>>, %arg3: memref<1x32xf32, #tpu.memory_space<vmem>>, %arg4: memref<32x32xbf16, #tpu.memory_space<vmem>>, %arg5: memref<1x32xf32, #tpu.memory_space<vmem>>, %arg6: memref<16x32xbf16, #tpu.memory_space<vmem>>) attributes {dimension_semantics = [#tpu.dimension_semantics<parallel>], iteration_bounds = array<i64: 1>, scalar_prefetch = 0 : i64, scratch_operands = 0 : i64, tpu.core_type = #tpu.core_type<tc>, window_params = [{transform_indices = @transform_0, window_bounds = array<i64: 16, 32>}, {pipeline_mode = #tpu.pipeline_mode<synchronous>, transform_indices = @transform_1, window_bounds = array<i64: 1, 32>}, {pipeline_mode = #tpu.pipeline_mode<synchronous>, transform_indices = @transform_2, window_bounds = array<i64: 1, 32>}, {pipeline_mode = #tpu.pipeline_mode<synchronous>, transform_indices = @transform_3, window_bounds = array<i64: 32, 32>}, {pipeline_mode = #tpu.pipeline_mode<synchronous>, transform_indices = @transform_4, window_bounds = array<i64: 1, 32>}, {transform_indices = @transform_5, window_bounds = array<i64: 16, 32>}]} {
    %c0 = arith.constant 0 : index
    %c0_0 = arith.constant 0 : index
    %0 = vector.load %arg1[%c0, %c0_0] : memref<16x32xf32, #tpu.memory_space<vmem>>, vector<16x32xf32>
    %c0_1 = arith.constant 0 : index
    %c0_2 = arith.constant 0 : index
    %1 = vector.load %arg2[%c0_1, %c0_2] : memref<1x32xf32, #tpu.memory_space<vmem>>, vector<1x32xf32>
    %c0_3 = arith.constant 0 : index
    %c0_4 = arith.constant 0 : index
    %2 = vector.load %arg3[%c0_3, %c0_4] : memref<1x32xf32, #tpu.memory_space<vmem>>, vector<1x32xf32>
    %cst = arith.constant dense<0.000000e+00> : vector<16xf32>
    %3 = vector.multi_reduction <add>, %0, %cst [1] : vector<16x32xf32> to vector<16xf32>
    %4 = vector.shape_cast %3 : vector<16xf32> to vector<16x1xf32>
    %cst_5 = arith.constant 3.200000e+01 : f32
    %5 = vector.broadcast %cst_5 : f32 to vector<16x1xf32>
    %6 = arith.divf %4, %5 : vector<16x1xf32>
    %7 = vector.broadcast %6 : vector<16x1xf32> to vector<16x32xf32>
    %8 = arith.subf %0, %7 : vector<16x32xf32>
    %9 = arith.mulf %8, %8 : vector<16x32xf32>
    %cst_6 = arith.constant dense<0.000000e+00> : vector<16xf32>
    %10 = vector.multi_reduction <add>, %9, %cst_6 [1] : vector<16x32xf32> to vector<16xf32>
    %11 = vector.shape_cast %10 : vector<16xf32> to vector<16x1xf32>
    %cst_7 = arith.constant 3.200000e+01 : f32
    %12 = vector.broadcast %cst_7 : f32 to vector<16x1xf32>
    %13 = arith.divf %11, %12 : vector<16x1xf32>
    %14 = vector.broadcast %6 : vector<16x1xf32> to vector<16x32xf32>
    %15 = arith.subf %0, %14 : vector<16x32xf32>
    %cst_8 = arith.constant 9.99999974E-6 : f32
    %16 = vector.broadcast %cst_8 : f32 to vector<16x1xf32>
    %17 = arith.addf %13, %16 : vector<16x1xf32>
    %18 = math.rsqrt %17 : vector<16x1xf32>
    %19 = vector.broadcast %18 : vector<16x1xf32> to vector<16x32xf32>
    %20 = arith.mulf %15, %19 : vector<16x32xf32>
    %21 = vector.broadcast %1 : vector<1x32xf32> to vector<16x32xf32>
    %22 = arith.mulf %20, %21 : vector<16x32xf32>
    %23 = vector.broadcast %2 : vector<1x32xf32> to vector<16x32xf32>
    %24 = arith.addf %22, %23 : vector<16x32xf32>
    %25 = arith.truncf %24 : vector<16x32xf32> to vector<16x32xbf16>
    %c0_9 = arith.constant 0 : index
    %c0_10 = arith.constant 0 : index
    %26 = vector.load %arg4[%c0_9, %c0_10] : memref<32x32xbf16, #tpu.memory_space<vmem>>, vector<32x32xbf16>
    %cst_11 = arith.constant dense<0.000000e+00> : vector<16x32xf32>
    %27 = tpu.matmul %25, %26, %cst_11 {dimension_numbers = #tpu.dot_dimension_numbers<[1], [0], [0], [1], [0, 0, 1, 1], [], []>} : vector<16x32xbf16>, vector<32x32xbf16>, vector<16x32xf32> -> vector<16x32xf32>
    %c0_12 = arith.constant 0 : index
    %c0_13 = arith.constant 0 : index
    %28 = vector.load %arg5[%c0_12, %c0_13] : memref<1x32xf32, #tpu.memory_space<vmem>>, vector<1x32xf32>
    %29 = vector.broadcast %28 : vector<1x32xf32> to vector<16x32xf32>
    %30 = arith.addf %27, %29 : vector<16x32xf32>
    %31 = arith.truncf %30 : vector<16x32xf32> to vector<16x32xbf16>
    %c0_14 = arith.constant 0 : index
    %c0_15 = arith.constant 0 : index
    %32 = vector.load %arg6[%c0_14, %c0_15] : memref<16x32xbf16, #tpu.memory_space<vmem>>, vector<16x32xbf16>
    tpu.vector_store %arg6[%c0_14, %c0_15], %31 {strides = array<i32>} : memref<16x32xbf16, #tpu.memory_space<vmem>>, vector<16x32xbf16>,
    return
  }
  func.func @transform_0(%arg0: i32) -> (i32, i32) {
    %c0_i32 = arith.constant 0 : i32
    %c0_i32_0 = arith.constant 0 : i32
    return %arg0, %c0_i32 : i32, i32
  }
  func.func @transform_1(%arg0: i32) -> (i32, i32) {
    %c0_i32 = arith.constant 0 : i32
    %c0_i32_0 = arith.constant 0 : i32
    %c0_i32_1 = arith.constant 0 : i32
    return %c0_i32, %c0_i32_0 : i32, i32
  }
  func.func @transform_2(%arg0: i32) -> (i32, i32) {
    %c0_i32 = arith.constant 0 : i32
    %c0_i32_0 = arith.constant 0 : i32
    %c0_i32_1 = arith.constant 0 : i32
    return %c0_i32, %c0_i32_0 : i32, i32
  }
  func.func @transform_3(%arg0: i32) -> (i32, i32) {
    %c0_i32 = arith.constant 0 : i32
    %c0_i32_0 = arith.constant 0 : i32
    %c0_i32_1 = arith.constant 0 : i32
    return %c0_i32, %c0_i32_0 : i32, i32
  }
  func.func @transform_4(%arg0: i32) -> (i32, i32) {
    %c0_i32 = arith.constant 0 : i32
    %c0_i32_0 = arith.constant 0 : i32
    %c0_i32_1 = arith.constant 0 : i32
    return %c0_i32, %c0_i32_0 : i32, i32
  }
  func.func @transform_5(%arg0: i32) -> (i32, i32) {
    %c0_i32 = arith.constant 0 : i32
    %c0_i32_0 = arith.constant 0 : i32
    return %arg0, %c0_i32 : i32, i32
  }
}

module attributes {stable_mosaic.version = 11 : i64} {
  func.func @_matmul_bias_kernel(%arg0: i32, %arg1: i32, %arg2: memref<32x32xbf16, #tpu.memory_space<vmem>>, %arg3: memref<32x128xbf16, #tpu.memory_space<vmem>>, %arg4: memref<1x128xf32, #tpu.memory_space<vmem>>, %arg5: memref<32x128xf32, #tpu.memory_space<vmem>>) attributes {dimension_semantics = [#tpu.dimension_semantics<parallel>, #tpu.dimension_semantics<parallel>], iteration_bounds = array<i64: 1, 1>, scalar_prefetch = 0 : i64, scratch_operands = 0 : i64, tpu.core_type = #tpu.core_type<tc>, window_params = [{transform_indices = @transform_0, window_bounds = array<i64: 32, 32>}, {transform_indices = @transform_1, window_bounds = array<i64: 32, 128>}, {transform_indices = @transform_2, window_bounds = array<i64: 1, 128>}, {transform_indices = @transform_3, window_bounds = array<i64: 32, 128>}]} {
    %c0 = arith.constant 0 : index
    %c0_0 = arith.constant 0 : index
    %0 = vector.load %arg2[%c0, %c0_0] : memref<32x32xbf16, #tpu.memory_space<vmem>>, vector<32x32xbf16>
    %c0_1 = arith.constant 0 : index
    %c0_2 = arith.constant 0 : index
    %1 = vector.load %arg3[%c0_1, %c0_2] : memref<32x128xbf16, #tpu.memory_space<vmem>>, vector<32x128xbf16>
    %cst = arith.constant dense<0.000000e+00> : vector<32x128xf32>
    %2 = tpu.matmul %0, %1, %cst {dimension_numbers = #tpu.dot_dimension_numbers<[1], [0], [0], [1], [0, 0, 1, 1], [], []>} : vector<32x32xbf16>, vector<32x128xbf16>, vector<32x128xf32> -> vector<32x128xf32>
    %c0_3 = arith.constant 0 : index
    %c0_4 = arith.constant 0 : index
    %3 = vector.load %arg4[%c0_3, %c0_4] : memref<1x128xf32, #tpu.memory_space<vmem>>, vector<1x128xf32>
    %4 = vector.broadcast %3 : vector<1x128xf32> to vector<32x128xf32>
    %5 = arith.addf %2, %4 : vector<32x128xf32>
    %c0_5 = arith.constant 0 : index
    %c0_6 = arith.constant 0 : index
    %6 = vector.load %arg5[%c0_5, %c0_6] : memref<32x128xf32, #tpu.memory_space<vmem>>, vector<32x128xf32>
    tpu.vector_store %arg5[%c0_5, %c0_6], %5 {strides = array<i32>} : memref<32x128xf32, #tpu.memory_space<vmem>>, vector<32x128xf32>,
    return
  }
  func.func @transform_0(%arg0: i32, %arg1: i32) -> (i32, i32) {
    %c0_i32 = arith.constant 0 : i32
    %c0_i32_0 = arith.constant 0 : i32
    return %arg0, %c0_i32 : i32, i32
  }
  func.func @transform_1(%arg0: i32, %arg1: i32) -> (i32, i32) {
    %c0_i32 = arith.constant 0 : i32
    %c0_i32_0 = arith.constant 0 : i32
    return %c0_i32, %arg1 : i32, i32
  }
  func.func @transform_2(%arg0: i32, %arg1: i32) -> (i32, i32) {
    %c0_i32 = arith.constant 0 : i32
    %c0_i32_0 = arith.constant 0 : i32
    return %c0_i32, %arg1 : i32, i32
  }
  func.func @transform_3(%arg0: i32, %arg1: i32) -> (i32, i32) {
    %c0_i32 = arith.constant 0 : i32
    return %arg0, %arg1 : i32, i32
  }
}

module attributes {stable_mosaic.version = 11 : i64} {
  func.func @_lm_dense_kernel(%arg0: i32, %arg1: memref<32x32xf32, #tpu.memory_space<vmem>>, %arg2: memref<32x32xbf16, #tpu.memory_space<vmem>>, %arg3: memref<1x32xf32, #tpu.memory_space<vmem>>, %arg4: memref<1x32xf32, #tpu.memory_space<vmem>>, %arg5: memref<1x32xf32, #tpu.memory_space<vmem>>, %arg6: memref<32x32xbf16, #tpu.memory_space<vmem>>) attributes {dimension_semantics = [#tpu.dimension_semantics<parallel>], iteration_bounds = array<i64: 1>, scalar_prefetch = 0 : i64, scratch_operands = 0 : i64, tpu.core_type = #tpu.core_type<tc>, window_params = [{transform_indices = @transform_0, window_bounds = array<i64: 32, 32>}, {pipeline_mode = #tpu.pipeline_mode<synchronous>, transform_indices = @transform_1, window_bounds = array<i64: 32, 32>}, {pipeline_mode = #tpu.pipeline_mode<synchronous>, transform_indices = @transform_2, window_bounds = array<i64: 1, 32>}, {pipeline_mode = #tpu.pipeline_mode<synchronous>, transform_indices = @transform_3, window_bounds = array<i64: 1, 32>}, {pipeline_mode = #tpu.pipeline_mode<synchronous>, transform_indices = @transform_4, window_bounds = array<i64: 1, 32>}, {transform_indices = @transform_5, window_bounds = array<i64: 32, 32>}]} {
    %c0 = arith.constant 0 : index
    %c0_0 = arith.constant 0 : index
    %0 = vector.load %arg1[%c0, %c0_0] : memref<32x32xf32, #tpu.memory_space<vmem>>, vector<32x32xf32>
    %1 = arith.truncf %0 : vector<32x32xf32> to vector<32x32xbf16>
    %c0_1 = arith.constant 0 : index
    %c0_2 = arith.constant 0 : index
    %2 = vector.load %arg2[%c0_1, %c0_2] : memref<32x32xbf16, #tpu.memory_space<vmem>>, vector<32x32xbf16>
    %cst = arith.constant dense<0.000000e+00> : vector<32x32xf32>
    %3 = tpu.matmul %1, %2, %cst {dimension_numbers = #tpu.dot_dimension_numbers<[1], [0], [0], [1], [0, 0, 1, 1], [], []>} : vector<32x32xbf16>, vector<32x32xbf16>, vector<32x32xf32> -> vector<32x32xf32>
    %c0_3 = arith.constant 0 : index
    %c0_4 = arith.constant 0 : index
    %4 = vector.load %arg3[%c0_3, %c0_4] : memref<1x32xf32, #tpu.memory_space<vmem>>, vector<1x32xf32>
    %5 = vector.broadcast %4 : vector<1x32xf32> to vector<32x32xf32>
    %6 = arith.addf %3, %5 : vector<32x32xf32>
    %cst_5 = arith.constant 5.000000e-01 : f32
    %7 = vector.broadcast %cst_5 : f32 to vector<32x32xf32>
    %8 = arith.mulf %7, %6 : vector<32x32xf32>
    %cst_6 = arith.constant 4.471500e-02 : f32
    %9 = vector.broadcast %cst_6 : f32 to vector<32x32xf32>
    %10 = arith.mulf %9, %6 : vector<32x32xf32>
    %11 = arith.mulf %10, %6 : vector<32x32xf32>
    %12 = arith.mulf %11, %6 : vector<32x32xf32>
    %13 = arith.addf %6, %12 : vector<32x32xf32>
    %cst_7 = arith.constant 0.797884583 : f32
    %14 = vector.broadcast %cst_7 : f32 to vector<32x32xf32>
    %15 = arith.mulf %14, %13 : vector<32x32xf32>
    %16 = math.tanh %15 : vector<32x32xf32>
    %cst_8 = arith.constant 1.000000e+00 : f32
    %17 = vector.broadcast %cst_8 : f32 to vector<32x32xf32>
    %18 = arith.addf %17, %16 : vector<32x32xf32>
    %19 = arith.mulf %8, %18 : vector<32x32xf32>
    %c0_9 = arith.constant 0 : index
    %c0_10 = arith.constant 0 : index
    %20 = vector.load %arg4[%c0_9, %c0_10] : memref<1x32xf32, #tpu.memory_space<vmem>>, vector<1x32xf32>
    %c0_11 = arith.constant 0 : index
    %c0_12 = arith.constant 0 : index
    %21 = vector.load %arg5[%c0_11, %c0_12] : memref<1x32xf32, #tpu.memory_space<vmem>>, vector<1x32xf32>
    %cst_13 = arith.constant dense<0.000000e+00> : vector<32xf32>
    %22 = vector.multi_reduction <add>, %19, %cst_13 [1] : vector<32x32xf32> to vector<32xf32>
    %23 = vector.shape_cast %22 : vector<32xf32> to vector<32x1xf32>
    %cst_14 = arith.constant 3.200000e+01 : f32
    %24 = vector.broadcast %cst_14 : f32 to vector<32x1xf32>
    %25 = arith.divf %23, %24 : vector<32x1xf32>
    %26 = vector.broadcast %25 : vector<32x1xf32> to vector<32x32xf32>
    %27 = arith.subf %19, %26 : vector<32x32xf32>
    %28 = arith.mulf %27, %27 : vector<32x32xf32>
    %cst_15 = arith.constant dense<0.000000e+00> : vector<32xf32>
    %29 = vector.multi_reduction <add>, %28, %cst_15 [1] : vector<32x32xf32> to vector<32xf32>
    %30 = vector.shape_cast %29 : vector<32xf32> to vector<32x1xf32>
    %cst_16 = arith.constant 3.200000e+01 : f32
    %31 = vector.broadcast %cst_16 : f32 to vector<32x1xf32>
    %32 = arith.divf %30, %31 : vector<32x1xf32>
    %33 = vector.broadcast %25 : vector<32x1xf32> to vector<32x32xf32>
    %34 = arith.subf %19, %33 : vector<32x32xf32>
    %cst_17 = arith.constant 9.99999974E-6 : f32
    %35 = vector.broadcast %cst_17 : f32 to vector<32x1xf32>
    %36 = arith.addf %32, %35 : vector<32x1xf32>
    %37 = math.rsqrt %36 : vector<32x1xf32>
    %38 = vector.broadcast %37 : vector<32x1xf32> to vector<32x32xf32>
    %39 = arith.mulf %34, %38 : vector<32x32xf32>
    %40 = vector.broadcast %20 : vector<1x32xf32> to vector<32x32xf32>
    %41 = arith.mulf %39, %40 : vector<32x32xf32>
    %42 = vector.broadcast %21 : vector<1x32xf32> to vector<32x32xf32>
    %43 = arith.addf %41, %42 : vector<32x32xf32>
    %44 = arith.truncf %43 : vector<32x32xf32> to vector<32x32xbf16>
    %c0_18 = arith.constant 0 : index
    %c0_19 = arith.constant 0 : index
    %45 = vector.load %arg6[%c0_18, %c0_19] : memref<32x32xbf16, #tpu.memory_space<vmem>>, vector<32x32xbf16>
    tpu.vector_store %arg6[%c0_18, %c0_19], %44 {strides = array<i32>} : memref<32x32xbf16, #tpu.memory_space<vmem>>, vector<32x32xbf16>,
    return
  }
  func.func @transform_0(%arg0: i32) -> (i32, i32) {
    %c0_i32 = arith.constant 0 : i32
    %c0_i32_0 = arith.constant 0 : i32
    return %arg0, %c0_i32 : i32, i32
  }
  func.func @transform_1(%arg0: i32) -> (i32, i32) {
    %c0_i32 = arith.constant 0 : i32
    %c0_i32_0 = arith.constant 0 : i32
    %c0_i32_1 = arith.constant 0 : i32
    return %c0_i32, %c0_i32_0 : i32, i32
  }
  func.func @transform_2(%arg0: i32) -> (i32, i32) {
    %c0_i32 = arith.constant 0 : i32
    %c0_i32_0 = arith.constant 0 : i32
    %c0_i32_1 = arith.constant 0 : i32
    return %c0_i32, %c0_i32_0 : i32, i32
  }
  func.func @transform_3(%arg0: i32) -> (i32, i32) {
    %c0_i32 = arith.constant 0 : i32
    %c0_i32_0 = arith.constant 0 : i32
    %c0_i32_1 = arith.constant 0 : i32
    return %c0_i32, %c0_i32_0 : i32, i32
  }
  func.func @transform_4(%arg0: i32) -> (i32, i32) {
    %c0_i32 = arith.constant 0 : i32
    %c0_i32_0 = arith.constant 0 : i32
    %c0_i32_1 = arith.constant 0 : i32
    return %c0_i32, %c0_i32_0 : i32, i32
  }
  func.func @transform_5(%arg0: i32) -> (i32, i32) {
    %c0_i32 = arith.constant 0 : i32
    %c0_i32_0 = arith.constant 0 : i32
    return %arg0, %c0_i32 : i32, i32
  }
}

</mosaic_0001>

<bundles_post_ra>
// kernel: pipet_forward.20
= control target key start
LH: loop header
LB: loop body
LE: loop exit
PB: predicated region body
PF: predicated region fallthrough
CT: control target
= control target key end

     0   :  { %vm27_vm0 = vcmask 261120   ;;  %v197_v14 = vmov 0.0   ;;  %vm198_vm1 = vmmov 0   ;;  %vm147_vm2 = vcmask 257024   ;;  %s273_s0 = inlined_call_operand.vmem [shape: f32[16,32], index: 0, kind: input, shape index: {}]   ;;  %s274_s3 = inlined_call_operand.vmem [shape: bf16[32,96], index: 3, kind: input, shape index: {}]   ;;  %s275_s1 = inlined_call_operand.vmem [shape: f32[1,32], index: 1, kind: input, shape index: {}]   ;;  %s276_s2 = inlined_call_operand.vmem [shape: f32[1,32], index: 2, kind: input, shape index: {}]   ;;  %s277_s4 = inlined_call_operand.vmem [shape: f32[1,96], index: 4, kind: input, shape index: {}]   ;;  %s278_s5 = inlined_call_operand.vmem [shape: bf16[16,32], index: 5, kind: output, shape index: {0}]   ;;  %s279_s6 = inlined_call_operand.vmem [shape: bf16[16,64], index: 6, kind: output, shape index: {1}]  }
   0x1   :  { %v23_v0 = vld [vmem:[%s273_s0] sm:$0xff]  ;;  %v24_v1 = vld [vmem:[%s273_s0 + $0x8] sm:$0xff]  ;;  %180 = vmatprep.subr.bf16.mxu0 %v197_v14  ;;  %184 = vmatprep.mubr.msk.bf16.mxu0 %vm198_vm1, %v197_v14  ;;  %vm156_vm3 = vcmask 519168  }
   0x2   :  { %v28_v2 = vsel %vm27_vm0, %v23_v0, 0.0  ;;  %v31_v3 = vsel %vm27_vm0, %v24_v1, 0.0  ;;  %v191_v15 = vld [vmem:[%s274_s3 + $0x8] sm:$0xff]   ;;  %v192_v16 = vld [vmem:[%s274_s3] sm:$0xff]  }
   0x3   :  { %29 = vadd.xlane.f32.xlu0 %v28_v2  ;;  %181 = vmatpush3.bf16.msra.mxu0 %v191_v15  ;;  %v167_v25 = vld [vmem:[%s275_s1] ss:$0 sm:$0xff] }
   0x4   :  { %182 = vmatprep.subr.bf16.mxu0 %v197_v14  ;;  %v168_v29 = vld [vmem:[%s276_s2] ss:$0 sm:$0xff]  ;;  %s199_s2 = smov 96  }
   0x5   :  { %v169_v34 = vld [vmem:[%s277_s4] ss:$0 sm:$0xff] }
   0x7   :  { %32 = vadd.xlane.f32.xlu0 %v31_v3  ;;  %183 = vmatpush3.bf16.msra.mxu0 %v192_v16 }
  0x8c   :  { %v30_v4 = vpop.xlane.xlu0 %29 }
  0x8d   :  { %v35_v5 = vmul.f32 0.03125, %v30_v4 }
  0x8f   :  { %v37_v6 = vsub.f32 %v23_v0, %v35_v5 }
  0x90   :  { %v33_v7 = vpop.xlane.xlu0 %32 }
  0x91   :  { %v36_v8 = vmul.f32 0.03125, %v33_v7  ;;  %v39_v9 = vmul.f32 %v37_v6, %v37_v6 }
  0x93   :  { %v38_v10 = vsub.f32 %v24_v1, %v36_v8  ;;  %v41_v11 = vsel %vm27_vm0, %v39_v9, 0.0 }
  0x94   :  { %42 = vadd.xlane.f32.xlu1 %v41_v11 }
  0x95   :  { %v40_v12 = vmul.f32 %v38_v10, %v38_v10 }
  0x97   :  { %v44_v13 = vsel %vm27_vm0, %v40_v12, 0.0 }
  0x98   :  { %45 = vadd.xlane.f32.xlu1 %v44_v13 }
 0x11d   :  { %v43_v17 = vpop.xlane.xlu1 %42 }
 0x11e   :  { %v47_v18 = vmul.f32 0.03125, %v43_v17 }
 0x120   :  { %v49_v19 = vadd.f32 1e-05, %v47_v18 }
 0x121   :  { %v46_v20 = vpop.xlane.xlu1 %45 }
 0x122   :  { %193 = vrsqrt.f32 %v49_v19  ;;  %v48_v21 = vmul.f32 0.03125, %v46_v20 }
 0x124   :  { %v50_v22 = vadd.f32 1e-05, %v48_v21 }
 0x126   :  { %195 = vrsqrt.f32 %v50_v22 }
 0x12f   :  { %v194_v23 = vpop.eup %193 }
 0x130   :  { %v53_v24 = vmul.f32 %v194_v23, %v37_v6 }
 0x132   :  { %v61_v28 = vmul.f32 %v167_v25, %v53_v24 }
 0x133   :  { %v196_v26 = vpop.eup %195 }
 0x134   :  { %v54_v27 = vmul.f32 %v196_v26, %v38_v10  ;;  %v69_v31 = vadd.f32 %v168_v29, %v61_v28 }
 0x136   :  { %v62_v30 = vmul.f32 %v167_v25, %v54_v27 }
 0x138   :  { %v70_v32 = vadd.f32 %v168_v29, %v62_v30 }
 0x13a   :  { %v71_v33 = vpack.c.bf16 %v70_v32, %v69_v31 }
 0x13c   :  { %185 = vmatmul.mubr.msk.bf16.vlgmr.msra.gmra.mxu0 %vm27_vm0, %v71_v33 }
 0x1fc   :  { %v132_v35 = vpop.f32.mrf.mxu0 }
 0x1fd   :  { %v133_v36 = vadd.f32 %v169_v34, %v132_v35 }
 0x1fe   :  { %v186_v37 = vpop.f32.mrf.mxu0 }
 0x1ff   :  { %v175_v38 = vpack.c.bf16 %v133_v36, %v133_v36 }
 0x200   :  { %v135_v39 = vpop.f32.mrf.mxu0 }
 0x201   :  { %148 = vst.msk [vmem:[%s278_s5] sm:$0xf] %vm147_vm2, %v175_v38  ;;  %v136_v40 = vadd.f32 %v169_v34, %v135_v39  ;;  %150 = vrot.lane.b32.xlu0 %v175_v38, %s199_s2 }
 0x202   :  { %v187_v41 = vpop.f32.mrf.mxu0 }
 0x203   :  { %v176_v42 = vpack.c.bf16 %v136_v40, %v136_v40 }
 0x205   :  { %149 = vst.msk [vmem:[%s278_s5 + $0x4] sm:$0xf] %vm147_vm2, %v176_v42  ;;  %152 = vrot.lane.b32.xlu1 %v176_v42, %s199_s2 }
 0x273   :  { %v151_v43 = vpop.permute.xlu0 %150 }
 0x274   :  { %157 = vst.msk [vmem:[%s279_s6] sm:$0xf] %vm156_vm3, %v151_v43 }
 0x277   :  { %v153_v44 = vpop.permute.xlu1 %152 }
 0x278   :  { %158 = vst.msk [vmem:[%s279_s6 + $0x4] sm:$0xf] %vm156_vm3, %v153_v44 }

// kernel: pipet_forward.26
= control target key start
LH: loop header
LB: loop body
LE: loop exit
PB: predicated region body
PF: predicated region fallthrough
CT: control target
= control target key end

     0   :  { %v124_v0 = vmov 0.0   ;;  %vm125_vm0 = vmmov 0   ;;  %vm41_vm1 = vcmask 261120   ;;  %vm94_vm2 = vcmask 519168   ;;  %s167_s1 = inlined_call_operand.vmem [shape: bf16[32,64], index: 1, kind: input, shape index: {}]   ;;  %s168_s0 = inlined_call_operand.vmem [shape: f32[16,32], index: 0, kind: input, shape index: {}]   ;;  %s169_s2 = inlined_call_operand.vmem [shape: f32[1,64], index: 2, kind: input, shape index: {}]   ;;  %s170_s3 = inlined_call_operand.vmem [shape: bf16[16,64], index: 3, kind: output, shape index: {}]  }
   0x1   :  { %112 = vmatprep.subr.bf16.mxu0 %v124_v0  ;;  %v122_v1 = vld [vmem:[%s167_s1 + $0x8] sm:$0xff]   ;;  %116 = vmatprep.mubr.msk.bf16.mxu0 %vm125_vm0, %v124_v0  ;;  %v123_v2 = vld [vmem:[%s167_s1] sm:$0xff]  }
   0x2   :  { %113 = vmatpush3.bf16.msra.mxu0 %v122_v1  ;;  %v15_v3 = vld [vmem:[%s168_s0] sm:$0xff]  ;;  %v16_v4 = vld [vmem:[%s168_s0 + $0x8] sm:$0xff] }
   0x3   :  { %114 = vmatprep.subr.bf16.mxu0 %v124_v0  ;;  %v17_v5 = vpack.c.bf16 %v16_v4, %v15_v3  ;;  %v101_v6 = vld [vmem:[%s169_s2] ss:$0 sm:$0xff] }
   0x6   :  { %115 = vmatpush3.bf16.msra.mxu0 %v123_v2 }
   0x9   :  { %117 = vmatmul.mubr.msk.bf16.vlgmr.msra.gmra.mxu0 %vm41_vm1, %v17_v5 }
  0xc9   :  { %v79_v7 = vpop.f32.mrf.mxu0 }
  0xca   :  { %v80_v8 = vadd.f32 %v101_v6, %v79_v7 }
  0xcb   :  { %v118_v9 = vpop.f32.mrf.mxu0 }
  0xcc   :  { %v107_v10 = vpack.c.bf16 %v80_v8, %v80_v8 }
  0xcd   :  { %v82_v11 = vpop.f32.mrf.mxu0 }
  0xce   :  { %95 = vst.msk [vmem:[%s170_s3] sm:$0xf] %vm94_vm2, %v107_v10  ;;  %v83_v12 = vadd.f32 %v101_v6, %v82_v11 }
  0xcf   :  { %v119_v13 = vpop.f32.mrf.mxu0 }
  0xd0   :  { %v108_v14 = vpack.c.bf16 %v83_v12, %v83_v12 }
  0xd2   :  { %96 = vst.msk [vmem:[%s170_s3 + $0x4] sm:$0xf] %vm94_vm2, %v108_v14 }

// kernel: pipet_forward.22
= control target key start
LH: loop header
LB: loop body
LE: loop exit
PB: predicated region body
PF: predicated region fallthrough
CT: control target
= control target key end

     0   :  { %vm35_vm0 = vcmask 261120   ;;  %v402_v15 = vmov 0.0   ;;  %vm403_vm1 = vmmov 0   ;;  %vm87_vm2 = vcmask 257024   ;;  %s519_s0 = inlined_call_operand.vmem [shape: f32[16,32], index: 0, kind: input, shape index: {}]   ;;  %s520_s3 = inlined_call_operand.vmem [shape: bf16[32,128], index: 3, kind: input, shape index: {}]   ;;  %s521_s1 = inlined_call_operand.vmem [shape: f32[1,32], index: 1, kind: input, shape index: {}]   ;;  %s522_s2 = inlined_call_operand.vmem [shape: f32[1,32], index: 2, kind: input, shape index: {}]   ;;  %s523_s5 = inlined_call_operand.vmem [shape: bf16[128,32], index: 5, kind: input, shape index: {}]   ;;  %s524_s4 = inlined_call_operand.vmem [shape: f32[1,128], index: 4, kind: input, shape index: {}]   ;;  %s525_s6 = inlined_call_operand.vmem [shape: f32[1,32], index: 6, kind: input, shape index: {}]   ;;  %s526_s7 = inlined_call_operand.vmem [shape: f32[16,32], index: 7, kind: output, shape index: {}]  }
   0x1   :  { %v447_v0 = vld [vmem:[%s519_s0] sm:$0xff]  ;;  %v452_v1 = vld [vmem:[%s519_s0 + $0x8] sm:$0xff]  ;;  %353 = vmatprep.subr.bf16.mxu0 %v402_v15  ;;  %90 = vst.msk [vmem:[#allocation2] sm:$0xff] %vm35_vm0, %v402_v15  ;;  %91 = vst.msk [vmem:[#allocation2 + $0x8] sm:$0xff] %vm35_vm0, %v402_v15  ;;  %361 = vmatprep.subr.bf16.mxu1 %v402_v15 }
   0x2   :  { %v36_v2 = vsel %vm35_vm0, %v447_v0, 0.0  ;;  %v39_v3 = vsel %vm35_vm0, %v452_v1, 0.0  ;;  %v383_v14 = vld [vmem:[%s520_s3 + $0x8] sm:$0xff]   ;;  %v384_v16 = vld [vmem:[%s520_s3] sm:$0xff]   ;;  %357 = vmatprep.mubr.msk.bf16.mxu0 %vm403_vm1, %v402_v15  ;;  %377 = vmatprep.mubr.msk.bf16.mxu1 %vm403_vm1, %v402_v15  ;;  %v386_v36 = vld [vmem:[%s523_s5 + $0x38] sm:$0xff]  }
   0x3   :  { %37 = vadd.xlane.f32.xlu0 %v36_v2  ;;  %354 = vmatpush3.bf16.msra.mxu0 %v383_v14  ;;  %v321_v24 = vld [vmem:[%s521_s1] ss:$0 sm:$0xff]  ;;  %v387_v37 = vld [vmem:[%s523_s5 + $0x30] sm:$0xff]   ;;  %v388_v38 = vld [vmem:[%s523_s5 + $0x28] sm:$0xff]  }
   0x4   :  { %355 = vmatprep.subr.bf16.mxu0 %v402_v15  ;;  %v322_v26 = vld [vmem:[%s522_s2] ss:$0 sm:$0xff]  ;;  %362 = vmatpush3.bf16.msra.mxu1 %v386_v36  ;;  %v390_v40 = vld [vmem:[%s523_s5 + $0x18] sm:$0xff]   ;;  %v391_v41 = vld [vmem:[%s523_s5 + $0x10] sm:$0xff]  }
   0x5   :  { %363 = vmatprep.subr.bf16.mxu1 %v402_v15  ;;  %v389_v39 = vld [vmem:[%s523_s5 + $0x20] sm:$0xff]   ;;  %v392_v42 = vld [vmem:[%s523_s5 + $0x8] sm:$0xff]  }
   0x6   :  { %v393_v43 = vld [vmem:[%s523_s5] sm:$0xff]  }
   0x7   :  { %40 = vadd.xlane.f32.xlu0 %v39_v3  ;;  %356 = vmatpush3.bf16.msra.mxu0 %v384_v16  ;;  %v325_v44 = vld [vmem:[%s524_s4] ss:$0 sm:$0xff] }
   0x8   :  { %364 = vmatpush3.bf16.msra.mxu1 %v387_v37 }
   0x9   :  { %365 = vmatprep.subr.bf16.mxu1 %v402_v15 }
   0xc   :  { %366 = vmatpush3.bf16.msra.mxu1 %v388_v38 }
   0xd   :  { %367 = vmatprep.subr.bf16.mxu1 %v402_v15 }
  0x10   :  { %368 = vmatpush3.bf16.msra.mxu1 %v389_v39 }
  0x11   :  { %369 = vmatprep.subr.bf16.mxu1 %v402_v15 }
  0x14   :  { %370 = vmatpush3.bf16.msra.mxu1 %v390_v40 }
  0x15   :  { %371 = vmatprep.subr.bf16.mxu1 %v402_v15 }
  0x18   :  { %372 = vmatpush3.bf16.msra.mxu1 %v391_v41 }
  0x19   :  { %373 = vmatprep.subr.bf16.mxu1 %v402_v15 }
  0x1c   :  { %374 = vmatpush3.bf16.msra.mxu1 %v392_v42 }
  0x1d   :  { %375 = vmatprep.subr.bf16.mxu1 %v402_v15 }
  0x20   :  { %376 = vmatpush3.bf16.msra.mxu1 %v393_v43 }
  0x8c   :  { %v38_v4 = vpop.xlane.xlu0 %37 }
  0x8d   :  { %v43_v5 = vmul.f32 0.03125, %v38_v4 }
  0x8f   :  { %v45_v6 = vsub.f32 %v447_v0, %v43_v5 }
  0x90   :  { %v41_v7 = vpop.xlane.xlu0 %40 }
  0x91   :  { %v44_v8 = vmul.f32 0.03125, %v41_v7  ;;  %v47_v9 = vmul.f32 %v45_v6, %v45_v6 }
  0x93   :  { %v46_v10 = vsub.f32 %v452_v1, %v44_v8  ;;  %v49_v11 = vsel %vm35_vm0, %v47_v9, 0.0  ;;  %v185_v8 = vld [vmem:[#allocation2] sm:$0xff] }
  0x94   :  { %50 = vadd.xlane.f32.xlu1 %v49_v11 }
  0x95   :  { %v48_v12 = vmul.f32 %v46_v10, %v46_v10 }
  0x97   :  { %v52_v13 = vsel %vm35_vm0, %v48_v12, 0.0  ;;  %v186_v12 = vld [vmem:[#allocation2 + $0x8] sm:$0xff] }
  0x98   :  { %53 = vadd.xlane.f32.xlu1 %v52_v13 }
 0x11d   :  { %v51_v17 = vpop.xlane.xlu1 %50 }
 0x11e   :  { %v55_v18 = vmul.f32 0.03125, %v51_v17  ;;  %v338_v17 = vld [vmem:[%s525_s6] ss:$0 sm:$0xff] }
 0x120   :  { %v57_v19 = vadd.f32 1e-05, %v55_v18 }
 0x121   :  { %v54_v20 = vpop.xlane.xlu1 %53 }
 0x122   :  { %394 = vrsqrt.f32 %v57_v19  ;;  %v56_v21 = vmul.f32 0.03125, %v54_v20 }
 0x124   :  { %v58_v22 = vadd.f32 1e-05, %v56_v21 }
 0x126   :  { %396 = vrsqrt.f32 %v58_v22 }
 0x12f   :  { %v395_v23 = vpop.eup %394 }
 0x130   :  { %v61_v25 = vmul.f32 %v395_v23, %v45_v6 }
 0x132   :  { %v69_v27 = vmul.f32 %v321_v24, %v61_v25 }
 0x133   :  { %v397_v28 = vpop.eup %396 }
 0x134   :  { %v77_v29 = vadd.f32 %v322_v26, %v69_v27  ;;  %v62_v30 = vmul.f32 %v397_v28, %v46_v10 }
 0x136   :  { %v339_v31 = vpack.c.bf16 %v77_v29, %v77_v29  ;;  %v70_v32 = vmul.f32 %v321_v24, %v62_v30 }
 0x138   :  { %88 = vst.msk [vmem:[#allocation3] sm:$0xf] %vm87_vm2, %v339_v31  ;;  %v78_v33 = vadd.f32 %v322_v26, %v70_v32 }
 0x13a   :  { %v340_v34 = vpack.c.bf16 %v78_v33, %v78_v33 }
 0x13c   :  { %89 = vst.msk [vmem:[#allocation3 + $0x4] sm:$0xf] %vm87_vm2, %v340_v34 }
 0x143   :  { %v385_v35 = vld [vmem:[#allocation3] sm:$0xff]  }
 0x144   :  { %358 = vmatmul.mubr.msk.bf16.vlgmr.msra.gmra.mxu0 %vm35_vm0, %v385_v35 }
 0x204   :  { %v160_v45 = vpop.f32.mrf.mxu0 }
 0x205   :  { %v161_v46 = vadd.f32 %v325_v44, %v160_v45 }
 0x206   :  { %v359_v47 = vpop.f32.mrf.mxu0 }
 0x207   :  { %v169_v48 = vmul.f32 0.044715, %v161_v46  ;;  %v167_v2 = vmul.f32 0.5, %v161_v46 }
 0x208   :  { %v163_v49 = vpop.f32.mrf.mxu0 }
 0x209   :  { %v171_v50 = vmul.f32 %v169_v48, %v161_v46  ;;  %v164_v51 = vadd.f32 %v325_v44, %v163_v49 }
 0x20a   :  { %v360_v52 = vpop.f32.mrf.mxu0 }
 0x20b   :  { %v173_v53 = vmul.f32 %v171_v50, %v161_v46  ;;  %v170_v54 = vmul.f32 0.044715, %v164_v51  ;;  %v168_v3 = vmul.f32 0.5, %v164_v51 }
 0x20d   :  { %v172_v55 = vmul.f32 %v170_v54, %v164_v51  ;;  %v175_v56 = vadd.f32 %v173_v53, %v161_v46 }
 0x20f   :  { %v174_v57 = vmul.f32 %v172_v55, %v164_v51  ;;  %v177_v58 = vmul.f32 0.7978846, %v175_v56 }
 0x211   :  { %v176_v59 = vadd.f32 %v174_v57, %v164_v51  ;;  %398 = vtanh.f32 %v177_v58 }
 0x213   :  { %v178_v60 = vmul.f32 0.7978846, %v176_v59 }
 0x215   :  { %400 = vtanh.f32 %v178_v60 }
 0x21e   :  { %v399_v61 = vpop.eup %398 }
 0x21f   :  { %v181_v62 = vadd.f32 1.0, %v399_v61 }
 0x221   :  { %v183_v5 = vmul.f32 %v181_v62, %v167_v2 }
 0x222   :  { %v401_v63 = vpop.eup %400 }
 0x223   :  { %v182_v4 = vadd.f32 1.0, %v401_v63 }
 0x225   :  { %v184_v6 = vmul.f32 %v182_v4, %v168_v3 }
 0x227   :  { %v187_v7 = vpack.c.bf16 %v184_v6, %v183_v5 }
 0x229   :  { %378 = vmatmul.mubr.bf16.vlgmr.msra.gmra.mxu1 %v187_v7 }
 0x2e9   :  { %v286_v9 = vpop.f32.mrf.mxu1 }
 0x2ea   :  { %v293_v10 = vadd.f32 %v286_v9, %v185_v8 }
 0x2eb   :  { %v379_v11 = vpop.f32.mrf.mxu1 }
 0x2ec   :  { %295 = vst.msk [vmem:[#allocation2] sm:$0xff] %vm35_vm0, %v293_v10 }
 0x2ed   :  { %v289_v13 = vpop.f32.mrf.mxu1 }
 0x2ee   :  { %v294_v14 = vadd.f32 %v289_v13, %v186_v12 }
 0x2ef   :  { %v380_v15 = vpop.f32.mrf.mxu1 }
 0x2f0   :  { %296 = vst.msk [vmem:[#allocation2 + $0x8] sm:$0xff] %vm35_vm0, %v294_v14 }
 0x2f3   :  { %v302_v16 = vld [vmem:[#allocation2] sm:$0xff] }
 0x2f4   :  { %v304_v18 = vadd.f32 %v302_v16, %v447_v0 }
 0x2f6   :  { %v313_v19 = vadd.f32 %v338_v17, %v304_v18 }
 0x2f7   :  { %v303_v20 = vld [vmem:[#allocation2 + $0x8] sm:$0xff] }
 0x2f8   :  { %315 = vst.msk [vmem:[%s526_s7] sm:$0xff] %vm35_vm0, %v313_v19  ;;  %v305_v21 = vadd.f32 %v303_v20, %v452_v1 }
 0x2fa   :  { %v314_v22 = vadd.f32 %v338_v17, %v305_v21 }
 0x2fc   :  { %316 = vst.msk [vmem:[%s526_s7 + $0x8] sm:$0xff] %vm35_vm0, %v314_v22 }

// kernel: pipet_forward.21
= control target key start
LH: loop header
LB: loop body
LE: loop exit
PB: predicated region body
PF: predicated region fallthrough
CT: control target
= control target key end

     0   :  { %s1291_s21 = smov 0   ;;  %s1293_s22 = smov 0   ;;  %s1428_s0 = inlined_call_operand.vmem [shape: bf16[2,8,32], index: 0, kind: input, shape index: {}]   ;;  %s1429_s1 = inlined_call_operand.vmem [shape: bf16[2,8,64], index: 1, kind: input, shape index: {}]   ;;  %s1430_s2 = inlined_call_operand.vmem [shape: bf16[2,8,8], index: 2, kind: input, shape index: {}]   ;;  %s1431_s3 = inlined_call_operand.vmem [shape: bf16[32,32], index: 3, kind: input, shape index: {}]   ;;  %s1432_s4 = inlined_call_operand.vmem [shape: f32[1,32], index: 4, kind: input, shape index: {}]   ;;  %s1433_s5 = inlined_call_operand.vmem [shape: f32[2,8,32], index: 5, kind: input, shape index: {}]   ;;  %s1434_s6 = inlined_call_operand.vmem [shape: f32[2,8,32], index: 6, kind: output, shape index: {}]  }
   0x1   :  { %s1295_s23 = smov 0  }
   0x2 LB: > { %s28_s24 = sadd.s32 1, %s1238_s22  ;;  %p1051_p0 = scmp.ge.s32.totalorder %s1242_s23, 1  ;;  %s1242_s23 = sphi %s1295_s23, %s16_s23   ;;  %s1238_s22 = sphi %s1293_s22, %s1436_s22   ;;  %s1234_s21 = sphi %s1291_s21, %s1435_s21  }
   0x3   : > { %p30_p1 = scmp.ge.s32.totalorder %s28_s24, 2  ;;  %p267_p2 = scmp.lt.s32.totalorder %s1242_s23, 3 }
   0x5   : > { %s1438_s24 = smov (%p30_p1, %s28_s24), 0  ;;  %p268_p3 = pnand %p1051_p0, %p267_p2 }
   0x6   : > { %p319_p4 = scmp.lt.s32.totalorder (!%p268_p3), %s1234_s21, 1  ;;  %s1246_s11 = smov (!%p268_p3), 96  }
   0x7   : > { %271 = sbr.rel (%p268_p3) target bundleno = 1587 (0x633), region = 44  ;;  %s1247_s12 = smov (!%p268_p3), 120  }
   0x8   : > { %s1248_s13 = smov (!%p268_p3), 112   ;;  %s1249_s14 = smov (!%p268_p3), 104  }
   0x9   : > { %s1250_s15 = smov (!%p268_p3), 88   ;;  %s1251_s16 = smov (!%p268_p3), 72  }
   0xa   : > { %s1252_s17 = smov (!%p268_p3), 80   ;;  %s1253_s18 = smov (!%p268_p3), 8  }
   0xb   : > { %s1254_s27 = smov (!%p268_p3), 16  }
   0xc   : > { %v1244_v0 = vmov 0.0   ;;  %vm1245_vm0 = vmmov 0   ;;  %s1440_s21 = smov (!%p319_p4, %s1234_s21), 1  ;;  %vm356_vm1 = vcmask 64512   ;;  %vm425_vm2 = vcmask 1043456  }
   0xd   : > { %1103 = vmatprep.subr.bf16.mxu0 %v1244_v0  ;;  %1105 = vmatprep.mubr.msk.bf16.mxu0 %vm1245_vm0, %v1244_v0  ;;  %s1052_s25 = sshll.u32 %s1440_s21, 2  ;;  %vm470_vm3 = vcmask 60416   ;;  %vm599_vm4 = vcmask 126016   ;;  %vm728_vm5 = vcmask 191616   ;;  %vm857_vm6 = vcmask 257216   ;;  %s1055_s29 = sshll.u32 %s1440_s21, 3 }
   0xe   : > { %1109 = vmatprep.subr.bf16.mxu1 %v1244_v0  ;;  %1111 = vmatprep.mubr.msk.bf16.mxu1 %vm1245_vm0, %v1244_v0  ;;  %s1321_s28 = scalar_lea.vmem %s1429_s1, %s1052_s25  ;;  %s1327_s7 = scalar_lea.vmem %s1428_s0, %s1052_s25  ;;  %vm876_vm7 = vcmask 261120  }
   0xf   : > { %v355_v1 = vld [vmem:[%s1321_s28] sm:$0xf]  ;;  %s336_s10 = scalar_lea.vmem %s1430_s2, %s1052_s25  ;;  %s343_s8 = scalar_lea.vmem %s1433_s5, %s1055_s29 }
  0x10   : > { %v361_v2 = vsel %vm356_vm1, %v355_v1, 0  ;;  %v354_v3 = vld [vmem:[%s1327_s7] sm:$0xf]  ;;  %v1058_v13 = vcombine.low %v355_v1, %v355_v1 }
  0x11   : > { %1104 = vmatpush3.bf16.xpose.msra.mxu0 %v361_v2  ;;  %v352_v4 = vld [vmem:[%s336_s10] sm:$0xf] }
  0x12   : > { %1121 = vmatprep.subr.bf16.mxu0 %v1244_v0  ;;  %v1338_v5 = vunpack.c.l.bf16 %v352_v4  ;;  %420 = vrot.lane.b32.xlu1 %v1058_v13, %s1246_s11  ;;  %v1343_v14 = vld [vmem:[%s1321_s28] ss:$0 sps:$4 sm:$0xff]  }
  0x13   : > { %v1347_v15 = vld [vmem:[%s1321_s28] ss:$0 sps:$4 sm:$0xff]  }
  0x14   : > { %v1199_v16 = vld [vmem:[%s1327_s7] ss:$0 sps:$4 sm:$0xff]  }
  0x15   : > { %v1352_v17 = vld [vmem:[%s1321_s28] ss:$0 sps:$4 sm:$0xff]   ;;  %s1255_s28 = smov 24  }
  0x16   : > { %482 = vrot.lane.b32.xlu1 %v1343_v14, %s1247_s12  ;;  %v1201_v18 = vld [vmem:[%s1327_s7] ss:$0 sps:$4 sm:$0xff]  }
  0x17   : > { %v1198_v26 = vld [vmem:[%s1327_s7] ss:$0 sps:$4 sm:$0xff]  }
  0x18   : > { %1106 = vmatmul.mubr.msk.bf16.vlgmr.msra.gmra.mxu0 %vm356_vm1, %v354_v3 }
  0x19   : > { %1123 = vmatprep.mubr.msk.bf16.mxu0 %vm1245_vm0, %v1244_v0 }
  0x1a   : > { %611 = vrot.lane.b32.xlu1 %v1347_v15, %s1248_s13 }
  0x1e   : > { %606 = vrot.lane.b32.xlu1 %v1199_v16, %s1248_s13  ;;  %s350_s13 = scalar_lea.vmem %s1434_s6, %s1055_s29 }
  0x22   : > { %740 = vrot.lane.b32.xlu1 %v1352_v17, %s1249_s14 }
  0x26   : > { %735 = vrot.lane.b32.xlu1 %v1201_v18, %s1249_s14 }
  0x84   : > { %v421_v24 = vpop.permute.xlu1 %420 }
  0x85   : > { %v427_v25 = vsel %vm425_vm2, %v421_v24, 0 }
  0x86   : > { %1110 = vmatpush3.bf16.msra.mxu1 %v427_v25 }
  0x87   : > { %1115 = vmatprep.subr.bf16.mxu1 %v1244_v0 }
  0x88   : > { %v483_v29 = vpop.permute.xlu1 %482 }
  0x89   : > { %v488_v31 = vsel %vm356_vm1, %v483_v29, 0 }
  0x8c   : > { %v612_v33 = vpop.permute.xlu1 %611 }
  0x8d   : > { %v617_v36 = vsel %vm356_vm1, %v612_v33, 0 }
  0x90   : > { %v607_v35 = vpop.permute.xlu1 %606 }
  0x94   : > { %v741_v37 = vpop.permute.xlu1 %740 }
  0x95   : > { %v746_v38 = vsel %vm356_vm1, %v741_v37, 0 }
  0x98   : > { %v736_v39 = vpop.permute.xlu1 %735 }
  0xd8   : > { %v397_v6 = vpop.f32.mrf.mxu0 }
  0xd9   : > { %v403_v7 = vmul.f32 0.35355338, %v397_v6 }
  0xda   : > { %v1107_v8 = vpop.f32.mrf.mxu0 }
  0xdb   : > { %v404_v9 = vadd.f32 %v403_v7, %v1338_v5 }
  0xdc   : > { %v400_v10 = vpop.f32.mrf.mxu0 }
  0xdd   : > { %v405_v11 = vsel %vm356_vm1, %v404_v9, -inf }
  0xde   : > { %406 = vmax.xlane.f32.xlu0 %v405_v11  ;;  %v1108_v12 = vpop.f32.mrf.mxu0 }
 0x167   : > { %v407_v19 = vpop.xlane.xlu0 %406 }
 0x168   : > { %v408_v20 = vsub.f32 %v404_v9, %v407_v19 }
 0x16a   : > { %v409_v21 = vmul.f32 1.442695, %v408_v20 }
 0x16c   : > { %1204 = vpow2.f32 %v409_v21 }
 0x179   : > { %v1205_v22 = vpop.eup %1204 }
 0x17a   : > { %v411_v23 = vsel %vm356_vm1, %v1205_v22, 0.0 }
 0x17b   : > { %412 = vadd.xlane.f32.xlu0 %v411_v23 }
 0x191   : > { %477 = vrot.lane.b32.xlu0 %v1198_v26, %s1247_s12 }
 0x204   : > { %v413_v27 = vpop.xlane.xlu0 %412 }
 0x205   : > { %1206 = vrcp.f32 %v413_v27 }
 0x208   : > { %v478_v34 = vpop.permute.xlu0 %477 }
 0x212   : > { %v1207_v28 = vpop.eup %1206 }
 0x213   : > { %v415_v30 = vmul.f32 %v1207_v28, %v1205_v22 }
 0x215   : > { %v416_v32 = vpack.c.bf16 %v415_v30, %v415_v30 }
 0x217   : > { %1112 = vmatmul.mubr.msk.bf16.vlgmr.msra.gmra.mxu1 %vm356_vm1, %v416_v32 }
 0x218   : > { %1116 = vmatpush3.bf16.xpose.msra.mxu1 %v488_v31  ;;  %1117 = vmatprep.mubr.msk.bf16.mxu1 %vm1245_vm0, %v1244_v0 }
 0x219   : > { %1127 = vmatprep.subr.bf16.mxu1 %v1244_v0 }
 0x21f   : > { %1118 = vmatmul.mubr.msk.bf16.vlgmr.msra.gmra.mxu1 %vm356_vm1, %v478_v34 }
 0x220   : > { %1128 = vmatpush3.bf16.xpose.msra.mxu1 %v617_v36  ;;  %1129 = vmatprep.mubr.msk.bf16.mxu1 %vm1245_vm0, %v1244_v0 }
 0x221   : > { %1139 = vmatprep.subr.bf16.mxu1 %v1244_v0 }
 0x227   : > { %1130 = vmatmul.mubr.msk.bf16.vlgmr.msra.gmra.mxu1 %vm356_vm1, %v607_v35 }
 0x228   : > { %1140 = vmatpush3.bf16.xpose.msra.mxu1 %v746_v38  ;;  %1141 = vmatprep.mubr.msk.bf16.mxu1 %vm1245_vm0, %v1244_v0 }
 0x229   : > { %1151 = vmatprep.subr.bf16.mxu1 %v1244_v0 }
 0x22f   : > { %1142 = vmatmul.mubr.msk.bf16.vlgmr.msra.gmra.mxu1 %vm356_vm1, %v736_v39 }
 0x230   : > { %1155 = vmatprep.mubr.msk.bf16.mxu1 %vm1245_vm0, %v1244_v0 }
 0x2d7   : > { %v463_v40 = vpop.f32.mrf.mxu1 }
 0x2d8   : > { %v469_v41 = vpack.c.bf16 %v463_v40, %v463_v40  ;;  %v1202_v40 = vld [vmem:[%s1431_s3 + $0x8] sm:$0xff]  }
 0x2d9   : > { %v1113_v42 = vpop.f32.mrf.mxu1  ;;  %1152 = vmatpush3.bf16.msra.mxu1 %v1202_v40 }
 0x2da   : > { %471 = vst.msk [vmem:[#allocation2] sm:$0xf] %vm470_vm3, %v469_v41  ;;  %v1203_v42 = vld [vmem:[%s1431_s3] sm:$0xff]   ;;  %1153 = vmatprep.subr.bf16.mxu1 %v1244_v0 }
 0x2db   : > { %v466_v43 = vpop.f32.mrf.mxu1 }
 0x2dd   : > { %v1114_v44 = vpop.f32.mrf.mxu1  ;;  %1154 = vmatpush3.bf16.msra.mxu1 %v1203_v42 }
 0x2df   : > { %v524_v45 = vpop.f32.mrf.mxu1 }
 0x2e0   : > { %v530_v46 = vmul.f32 0.35355338, %v524_v45 }
 0x2e1   : > { %v1119_v47 = vpop.f32.mrf.mxu1 }
 0x2e2   : > { %v531_v48 = vadd.f32 %v530_v46, %v1338_v5 }
 0x2e3   : > { %v527_v49 = vpop.f32.mrf.mxu1 }
 0x2e4   : > { %v532_v50 = vsel %vm356_vm1, %v531_v48, -inf }
 0x2e5   : > { %533 = vmax.xlane.f32.xlu1 %v532_v50  ;;  %v1120_v51 = vpop.f32.mrf.mxu1 }
 0x2e7   : > { %v653_v52 = vpop.f32.mrf.mxu1 }
 0x2e8   : > { %v659_v53 = vmul.f32 0.35355338, %v653_v52 }
 0x2e9   : > { %v1131_v54 = vpop.f32.mrf.mxu1 }
 0x2ea   : > { %v660_v55 = vadd.f32 %v659_v53, %v1338_v5 }
 0x2eb   : > { %v656_v56 = vpop.f32.mrf.mxu1 }
 0x2ec   : > { %v661_v57 = vsel %vm356_vm1, %v660_v55, -inf  ;;  %v920_v56 = vld [vmem:[%s343_s8] sm:$0xff] }
 0x2ed   : > { %662 = vmax.xlane.f32.xlu0 %v661_v57  ;;  %v1132_v58 = vpop.f32.mrf.mxu1 }
 0x2ee   : > { %v1078_v58 = vld [vmem:[%s1432_s4] ss:$0 sm:$0xff] }
 0x2ef   : > { %v782_v59 = vpop.f32.mrf.mxu1 }
 0x2f0   : > { %v788_v60 = vmul.f32 0.35355338, %v782_v59 }
 0x2f1   : > { %v1143_v61 = vpop.f32.mrf.mxu1 }
 0x2f2   : > { %v789_v62 = vadd.f32 %v788_v60, %v1338_v5 }
 0x2f3   : > { %v785_v63 = vpop.f32.mrf.mxu1 }
 0x2f4   : > { %v790_v1 = vsel %vm356_vm1, %v789_v62, -inf }
 0x2f5   : > { %791 = vmax.xlane.f32.xlu1 %v790_v1  ;;  %v1144_v2 = vpop.f32.mrf.mxu1 }
 0x306   : > { %544 = vrot.lane.b32.xlu1 %v1343_v14, %s1250_s15 }
 0x36e   : > { %v534_v3 = vpop.xlane.xlu1 %533 }
 0x36f   : > { %v535_v4 = vsub.f32 %v531_v48, %v534_v3 }
 0x371   : > { %v536_v6 = vmul.f32 1.442695, %v535_v4 }
 0x373   : > { %1208 = vpow2.f32 %v536_v6 }
 0x376   : > { %v663_v7 = vpop.xlane.xlu0 %662 }
 0x377   : > { %v664_v8 = vsub.f32 %v660_v55, %v663_v7 }
 0x379   : > { %v665_v9 = vmul.f32 1.442695, %v664_v8 }
 0x37b   : > { %1210 = vpow2.f32 %v665_v9 }
 0x37e   : > { %v792_v10 = vpop.xlane.xlu1 %791 }
 0x37f   : > { %v793_v11 = vsub.f32 %v789_v62, %v792_v10 }
 0x380   : > { %v1209_v12 = vpop.eup %1208 }
 0x381   : > { %v794_v5 = vmul.f32 1.442695, %v793_v11  ;;  %v538_v13 = vsel %vm356_vm1, %v1209_v12, 0.0 }
 0x382   : > { %539 = vadd.xlane.f32.xlu0 %v538_v13  ;;  %v545_v16 = vpop.permute.xlu1 %544 }
 0x383   : > { %1212 = vpow2.f32 %v794_v5  ;;  %v550_v18 = vsel %vm425_vm2, %v545_v16, 0 }
 0x384   : > { %1122 = vmatpush3.bf16.msra.mxu0 %v550_v18 }
 0x385   : > { %1133 = vmatprep.subr.bf16.mxu0 %v1244_v0 }
 0x388   : > { %v1211_v14 = vpop.eup %1210 }
 0x389   : > { %v667_v19 = vsel %vm356_vm1, %v1211_v14, 0.0 }
 0x38a   : > { %668 = vadd.xlane.f32.xlu1 %v667_v19 }
 0x390   : > { %v1213_v20 = vpop.eup %1212 }
 0x391   : > { %v796_v21 = vsel %vm356_vm1, %v1213_v20, 0.0 }
 0x392   : > { %797 = vadd.xlane.f32.xlu0 %v796_v21 }
 0x39b   : > { %802 = vrot.lane.b32.xlu1 %v1352_v17, %s1251_s16 }
 0x3a8   : > { %673 = vrot.lane.b32.xlu0 %v1347_v15, %s1252_s17 }
 0x40b   : > { %v540_v22 = vpop.xlane.xlu0 %539 }
 0x40c   : > { %1214 = vrcp.f32 %v540_v22 }
 0x413   : > { %v669_v23 = vpop.xlane.xlu1 %668 }
 0x414   : > { %1216 = vrcp.f32 %v669_v23 }
 0x417   : > { %v803_v15 = vpop.permute.xlu1 %802 }
 0x418   : > { %v808_v32 = vsel %vm425_vm2, %v803_v15, 0 }
 0x419   : > { %v1215_v24 = vpop.eup %1214 }
 0x41a   : > { %v542_v25 = vmul.f32 %v1215_v24, %v1209_v12 }
 0x41b   : > { %v798_v26 = vpop.xlane.xlu0 %797 }
 0x41c   : > { %1218 = vrcp.f32 %v798_v26  ;;  %v543_v27 = vpack.c.bf16 %v542_v25, %v542_v25 }
 0x41e   : > { %1124 = vmatmul.mubr.msk.bf16.vlgmr.msra.gmra.mxu0 %vm356_vm1, %v543_v27 }
 0x41f   : > { %v674_v28 = vpop.permute.xlu0 %673  ;;  %1135 = vmatprep.mubr.msk.bf16.mxu0 %vm1245_vm0, %v1244_v0 }
 0x420   : > { %v679_v17 = vsel %vm425_vm2, %v674_v28, 0 }
 0x421   : > { %v1217_v29 = vpop.eup %1216  ;;  %1134 = vmatpush3.bf16.msra.mxu0 %v679_v17 }
 0x422   : > { %v671_v30 = vmul.f32 %v1217_v29, %v1211_v14  ;;  %1145 = vmatprep.subr.bf16.mxu0 %v1244_v0 }
 0x424   : > { %v672_v31 = vpack.c.bf16 %v671_v30, %v671_v30 }
 0x426   : > { %1136 = vmatmul.mubr.msk.bf16.vlgmr.msra.gmra.mxu0 %vm356_vm1, %v672_v31 }
 0x427   : > { %1146 = vmatpush3.bf16.msra.mxu0 %v808_v32  ;;  %1147 = vmatprep.mubr.msk.bf16.mxu0 %vm1245_vm0, %v1244_v0 }
 0x429   : > { %v1219_v33 = vpop.eup %1218 }
 0x42a   : > { %v800_v34 = vmul.f32 %v1219_v33, %v1213_v20 }
 0x42c   : > { %v801_v35 = vpack.c.bf16 %v800_v34, %v800_v34 }
 0x42e   : > { %1148 = vmatmul.mubr.msk.bf16.vlgmr.msra.gmra.mxu0 %vm356_vm1, %v801_v35 }
 0x4de   : > { %v586_v36 = vpop.f32.mrf.mxu0 }
 0x4df   : > { %v1081_v37 = vpack.c.bf16 %v586_v36, %v586_v36 }
 0x4e0   : > { %v1125_v38 = vpop.f32.mrf.mxu0 }
 0x4e1   : > { %596 = vrot.lane.b32.xlu1 %v1081_v37, %s1253_s18 }
 0x4e2   : > { %v589_v39 = vpop.f32.mrf.mxu0 }
 0x4e4   : > { %v1126_v41 = vpop.f32.mrf.mxu0 }
 0x4e6   : > { %v715_v43 = vpop.f32.mrf.mxu0 }
 0x4e7   : > { %v1082_v44 = vpack.c.bf16 %v715_v43, %v715_v43 }
 0x4e8   : > { %v1137_v45 = vpop.f32.mrf.mxu0 }
 0x4e9   : > { %725 = vrot.lane.b32.xlu0 %v1082_v44, %s1254_s27 }
 0x4ea   : > { %v718_v46 = vpop.f32.mrf.mxu0 }
 0x4ec   : > { %v1138_v47 = vpop.f32.mrf.mxu0 }
 0x4ee   : > { %v844_v48 = vpop.f32.mrf.mxu0 }
 0x4ef   : > { %v1083_v49 = vpack.c.bf16 %v844_v48, %v844_v48 }
 0x4f0   : > { %v1149_v50 = vpop.f32.mrf.mxu0 }
 0x4f1   : > { %854 = vrot.lane.b32.xlu1 %v1083_v49, %s1255_s28 }
 0x4f2   : > { %v847_v51 = vpop.f32.mrf.mxu0 }
 0x4f4   : > { %v1150_v52 = vpop.f32.mrf.mxu0 }
 0x553   : > { %v597_v53 = vpop.permute.xlu1 %596 }
 0x554   : > { %600 = vst.msk [vmem:[#allocation2] sm:$0xf] %vm599_vm4, %v597_v53 }
 0x55b   : > { %v726_v0 = vpop.permute.xlu0 %725 }
 0x55c   : > { %729 = vst.msk [vmem:[#allocation2] sm:$0xf] %vm728_vm5, %v726_v0 }
 0x563   : > { %v855_v54 = vpop.permute.xlu1 %854 }
 0x564   : > { %858 = vst.msk [vmem:[#allocation2] sm:$0xf] %vm857_vm6, %v855_v54 }
 0x56b   : > { %v859_v55 = vld [vmem:[#allocation2] sm:$0xf] }
 0x56c   : > { %1156 = vmatmul.mubr.msk.bf16.vlgmr.msra.gmra.mxu1 %vm876_vm7, %v859_v55 }
 0x62c   : > { %v914_v57 = vpop.f32.mrf.mxu1 }
 0x62d   : > { %v921_v59 = vadd.f32 %v920_v56, %v914_v57 }
 0x62e   : > { %v1157_v60 = vpop.f32.mrf.mxu1 }
 0x62f   : > { %v929_v61 = vadd.f32 %v1078_v58, %v921_v59 }
 0x630   : > { %v917_v62 = vpop.f32.mrf.mxu1 }
 0x631   : > { %930 = vst.msk [vmem:[%s350_s13] sm:$0xff] %vm876_vm7, %v929_v61 }
 0x632   : > { %v1158_v63 = vpop.f32.mrf.mxu1 }
 0x633 PF: > { %s16_s23 = sadd.s32 1, %s1242_s23   ;;  %s1435_s21 = smov %s1238_s22 }
 0x634   : > { %p13_p5 = scmp.ge.s32.totalorder %s16_s23, 4   ;;  %s1436_s22 = smov %s1438_s24 }
 0x636   :  { %15 = sbr.rel (!%p13_p5) target bundleno = 2 (0x2), region = 83 }

// kernel: pipet_forward.39
= control target key start
LH: loop header
LB: loop body
LE: loop exit
PB: predicated region body
PF: predicated region fallthrough
CT: control target
= control target key end

     0   :  { %vm52_vm0 = vcmask 261120   ;;  %s186_s1 = inlined_call_operand.vmem [shape: bf16[32,128], index: 1, kind: input, shape index: {}]   ;;  %s187_s0 = inlined_call_operand.vmem [shape: bf16[32,32], index: 0, kind: input, shape index: {}]   ;;  %s188_s2 = inlined_call_operand.vmem [shape: f32[1,128], index: 2, kind: input, shape index: {}]   ;;  %s189_s3 = inlined_call_operand.vmem [shape: f32[32,128], index: 3, kind: output, shape index: {}]  }
   0x1   :  { %v135_v0 = vld [vmem:[%s186_s1 + $0x8] sm:$0xff]   ;;  %v136_v1 = vld [vmem:[%s186_s1] sm:$0xff]  }
   0x2   :  { %127 = vmatprep.subr.bf16.mxu0 %v135_v0  ;;  %v137_v2 = vld [vmem:[%s187_s0] sm:$0xff]   ;;  %v138_v3 = vld [vmem:[%s187_s0 + $0x8] sm:$0xff]  }
   0x3   :  { %128 = vmatpush3.bf16.msra.mxu0 %v135_v0  ;;  %131 = vmatprep.mubr.msk.bf16.mxu0 %vm52_vm0, %v137_v2  ;;  %v116_v4 = vld [vmem:[%s188_s2] ss:$0 sm:$0xff] }
   0x4   :  { %129 = vmatprep.subr.bf16.mxu0 %v136_v1 }
   0x7   :  { %130 = vmatpush3.bf16.msra.mxu0 %v136_v1 }
   0xa   :  { %132 = vmatmul.mubr.msk.bf16.vlgmr.msra.gmra.mxu0 %vm52_vm0, %v138_v3 }
  0xca   :  { %v133_v5 = vpop.f32.mrf.mxu0 }
  0xcb   :  { %v102_v6 = vadd.f32 %v133_v5, %v116_v4 }
  0xcc   :  { %v93_v7 = vpop.f32.mrf.mxu0 }
  0xcd   :  { %110 = vst [vmem:[%s189_s3 + $0x10] sm:$0xff] %v102_v6  ;;  %v94_v8 = vadd.f32 %v116_v4, %v93_v7 }
  0xce   :  { %v134_v9 = vpop.f32.mrf.mxu0 }
  0xcf   :  { %108 = vst [vmem:[%s189_s3] sm:$0xff] %v94_v8  ;;  %v105_v10 = vadd.f32 %v134_v9, %v116_v4 }
  0xd0   :  { %v96_v11 = vpop.f32.mrf.mxu0 }
  0xd1   :  { %111 = vst [vmem:[%s189_s3 + $0x18] sm:$0xff] %v105_v10  ;;  %v97_v12 = vadd.f32 %v116_v4, %v96_v11 }
  0xd3   :  { %109 = vst [vmem:[%s189_s3 + $0x8] sm:$0xff] %v97_v12 }

// kernel: pipet_forward.25
= control target key start
LH: loop header
LB: loop body
LE: loop exit
PB: predicated region body
PF: predicated region fallthrough
CT: control target
= control target key end

     0   :  { %vm25_vm0 = vcmask 261120   ;;  %v181_v14 = vmov 0.0   ;;  %vm182_vm1 = vmmov 0   ;;  %vm145_vm2 = vcmask 257024   ;;  %s245_s0 = inlined_call_operand.vmem [shape: f32[16,32], index: 0, kind: input, shape index: {}]   ;;  %s246_s3 = inlined_call_operand.vmem [shape: bf16[32,32], index: 3, kind: input, shape index: {}]   ;;  %s247_s1 = inlined_call_operand.vmem [shape: f32[1,32], index: 1, kind: input, shape index: {}]   ;;  %s248_s2 = inlined_call_operand.vmem [shape: f32[1,32], index: 2, kind: input, shape index: {}]   ;;  %s249_s4 = inlined_call_operand.vmem [shape: f32[1,32], index: 4, kind: input, shape index: {}]   ;;  %s250_s5 = inlined_call_operand.vmem [shape: bf16[16,32], index: 5, kind: output, shape index: {}]  }
   0x1   :  { %v21_v0 = vld [vmem:[%s245_s0] sm:$0xff]  ;;  %v22_v1 = vld [vmem:[%s245_s0 + $0x8] sm:$0xff]  ;;  %165 = vmatprep.subr.bf16.mxu0 %v181_v14  ;;  %169 = vmatprep.mubr.msk.bf16.mxu0 %vm182_vm1, %v181_v14 }
   0x2   :  { %v26_v2 = vsel %vm25_vm0, %v21_v0, 0.0  ;;  %v29_v3 = vsel %vm25_vm0, %v22_v1, 0.0  ;;  %v175_v15 = vld [vmem:[%s246_s3 + $0x8] sm:$0xff]   ;;  %v176_v16 = vld [vmem:[%s246_s3] sm:$0xff]  }
   0x3   :  { %27 = vadd.xlane.f32.xlu0 %v26_v2  ;;  %166 = vmatpush3.bf16.msra.mxu0 %v175_v15  ;;  %v152_v25 = vld [vmem:[%s247_s1] ss:$0 sm:$0xff] }
   0x4   :  { %167 = vmatprep.subr.bf16.mxu0 %v181_v14  ;;  %v153_v29 = vld [vmem:[%s248_s2] ss:$0 sm:$0xff] }
   0x5   :  { %v154_v34 = vld [vmem:[%s249_s4] ss:$0 sm:$0xff] }
   0x7   :  { %30 = vadd.xlane.f32.xlu0 %v29_v3  ;;  %168 = vmatpush3.bf16.msra.mxu0 %v176_v16 }
  0x8c   :  { %v28_v4 = vpop.xlane.xlu0 %27 }
  0x8d   :  { %v33_v5 = vmul.f32 0.03125, %v28_v4 }
  0x8f   :  { %v35_v6 = vsub.f32 %v21_v0, %v33_v5 }
  0x90   :  { %v31_v7 = vpop.xlane.xlu0 %30 }
  0x91   :  { %v34_v8 = vmul.f32 0.03125, %v31_v7  ;;  %v37_v9 = vmul.f32 %v35_v6, %v35_v6 }
  0x93   :  { %v36_v10 = vsub.f32 %v22_v1, %v34_v8  ;;  %v39_v11 = vsel %vm25_vm0, %v37_v9, 0.0 }
  0x94   :  { %40 = vadd.xlane.f32.xlu1 %v39_v11 }
  0x95   :  { %v38_v12 = vmul.f32 %v36_v10, %v36_v10 }
  0x97   :  { %v42_v13 = vsel %vm25_vm0, %v38_v12, 0.0 }
  0x98   :  { %43 = vadd.xlane.f32.xlu1 %v42_v13 }
 0x11d   :  { %v41_v17 = vpop.xlane.xlu1 %40 }
 0x11e   :  { %v45_v18 = vmul.f32 0.03125, %v41_v17 }
 0x120   :  { %v47_v19 = vadd.f32 1e-05, %v45_v18 }
 0x121   :  { %v44_v20 = vpop.xlane.xlu1 %43 }
 0x122   :  { %177 = vrsqrt.f32 %v47_v19  ;;  %v46_v21 = vmul.f32 0.03125, %v44_v20 }
 0x124   :  { %v48_v22 = vadd.f32 1e-05, %v46_v21 }
 0x126   :  { %179 = vrsqrt.f32 %v48_v22 }
 0x12f   :  { %v178_v23 = vpop.eup %177 }
 0x130   :  { %v51_v24 = vmul.f32 %v178_v23, %v35_v6 }
 0x132   :  { %v59_v28 = vmul.f32 %v152_v25, %v51_v24 }
 0x133   :  { %v180_v26 = vpop.eup %179 }
 0x134   :  { %v52_v27 = vmul.f32 %v180_v26, %v36_v10  ;;  %v67_v31 = vadd.f32 %v153_v29, %v59_v28 }
 0x136   :  { %v60_v30 = vmul.f32 %v152_v25, %v52_v27 }
 0x138   :  { %v68_v32 = vadd.f32 %v153_v29, %v60_v30 }
 0x13a   :  { %v69_v33 = vpack.c.bf16 %v68_v32, %v67_v31 }
 0x13c   :  { %170 = vmatmul.mubr.msk.bf16.vlgmr.msra.gmra.mxu0 %vm25_vm0, %v69_v33 }
 0x1fc   :  { %v130_v35 = vpop.f32.mrf.mxu0 }
 0x1fd   :  { %v131_v36 = vadd.f32 %v154_v34, %v130_v35 }
 0x1fe   :  { %v171_v37 = vpop.f32.mrf.mxu0 }
 0x1ff   :  { %v160_v38 = vpack.c.bf16 %v131_v36, %v131_v36 }
 0x200   :  { %v133_v39 = vpop.f32.mrf.mxu0 }
 0x201   :  { %146 = vst.msk [vmem:[%s250_s5] sm:$0xf] %vm145_vm2, %v160_v38  ;;  %v134_v40 = vadd.f32 %v154_v34, %v133_v39 }
 0x202   :  { %v172_v41 = vpop.f32.mrf.mxu0 }
 0x203   :  { %v161_v42 = vpack.c.bf16 %v134_v40, %v134_v40 }
 0x205   :  { %147 = vst.msk [vmem:[%s250_s5 + $0x4] sm:$0xf] %vm145_vm2, %v161_v42 }

// kernel: pipet_forward.38
= control target key start
LH: loop header
LB: loop body
LE: loop exit
PB: predicated region body
PF: predicated region fallthrough
CT: control target
= control target key end

     0   :  { %vm50_vm0 = vcmask 261120   ;;  %vm233_vm1 = vcmask 257024   ;;  %s370_s1 = inlined_call_operand.vmem [shape: bf16[32,32], index: 1, kind: input, shape index: {}]   ;;  %s371_s0 = inlined_call_operand.vmem [shape: f32[32,32], index: 0, kind: input, shape index: {}]   ;;  %s372_s2 = inlined_call_operand.vmem [shape: f32[1,32], index: 2, kind: input, shape index: {}]   ;;  %s373_s3 = inlined_call_operand.vmem [shape: f32[1,32], index: 3, kind: input, shape index: {}]   ;;  %s374_s4 = inlined_call_operand.vmem [shape: f32[1,32], index: 4, kind: input, shape index: {}]   ;;  %s375_s5 = inlined_call_operand.vmem [shape: bf16[32,32], index: 5, kind: output, shape index: {}]  }
   0x1   :  { %v269_v0 = vld [vmem:[%s370_s1 + $0x8] sm:$0xff]   ;;  %v270_v1 = vld [vmem:[%s370_s1] sm:$0xff]   ;;  %v23_v5 = vld [vmem:[%s371_s0 + $0x10] sm:$0xff] }
   0x2   :  { %261 = vmatprep.subr.bf16.mxu0 %v269_v0  ;;  %v21_v2 = vld [vmem:[%s371_s0] sm:$0xff]  ;;  %v22_v3 = vld [vmem:[%s371_s0 + $0x8] sm:$0xff]  ;;  %v24_v6 = vld [vmem:[%s371_s0 + $0x18] sm:$0xff] }
   0x3   :  { %262 = vmatpush3.bf16.msra.mxu0 %v269_v0  ;;  %v25_v4 = vpack.c.bf16 %v22_v3, %v21_v2  ;;  %v26_v7 = vpack.c.bf16 %v24_v6, %v23_v5  ;;  %v242_v8 = vld [vmem:[%s372_s2] ss:$0 sm:$0xff] }
   0x4   :  { %263 = vmatprep.subr.bf16.mxu0 %v270_v1 }
   0x5   :  { %265 = vmatprep.mubr.msk.bf16.mxu0 %vm50_vm0, %v25_v4 }
   0x7   :  { %264 = vmatpush3.bf16.msra.mxu0 %v270_v1 }
   0xa   :  { %266 = vmatmul.mubr.msk.bf16.vlgmr.msra.gmra.mxu0 %vm50_vm0, %v26_v7 }
  0xca   :  { %v267_v9 = vpop.f32.mrf.mxu0 }
  0xcb   :  { %v100_v10 = vadd.f32 %v267_v9, %v242_v8 }
  0xcc   :  { %v91_v11 = vpop.f32.mrf.mxu0 }
  0xcd   :  { %v112_v12 = vmul.f32 0.044715, %v100_v10  ;;  %v92_v13 = vadd.f32 %v242_v8, %v91_v11  ;;  %v108_v38 = vmul.f32 0.5, %v100_v10 }
  0xce   :  { %v268_v14 = vpop.f32.mrf.mxu0 }
  0xcf   :  { %v110_v15 = vmul.f32 0.044715, %v92_v13  ;;  %v103_v16 = vadd.f32 %v268_v14, %v242_v8  ;;  %v116_v17 = vmul.f32 %v112_v12, %v100_v10  ;;  %v106_v42 = vmul.f32 0.5, %v92_v13 }
  0xd0   :  { %v94_v18 = vpop.f32.mrf.mxu0 }
  0xd1   :  { %v113_v19 = vmul.f32 0.044715, %v103_v16  ;;  %v95_v20 = vadd.f32 %v242_v8, %v94_v18  ;;  %v120_v21 = vmul.f32 %v116_v17, %v100_v10  ;;  %v114_v22 = vmul.f32 %v110_v15, %v92_v13 }
  0xd2   :  { %v109_v47 = vmul.f32 0.5, %v103_v16 }
  0xd3   :  { %v111_v23 = vmul.f32 0.044715, %v95_v20  ;;  %v124_v24 = vadd.f32 %v120_v21, %v100_v10  ;;  %v118_v25 = vmul.f32 %v114_v22, %v92_v13  ;;  %v117_v26 = vmul.f32 %v113_v19, %v103_v16 }
  0xd4   :  { %v107_v52 = vmul.f32 0.5, %v95_v20 }
  0xd5   :  { %v128_v27 = vmul.f32 0.7978846, %v124_v24  ;;  %v122_v28 = vadd.f32 %v118_v25, %v92_v13  ;;  %v121_v29 = vmul.f32 %v117_v26, %v103_v16  ;;  %v115_v30 = vmul.f32 %v111_v23, %v95_v20  ;;  %v247_v26 = vld [vmem:[%s373_s3] ss:$0 sm:$0xff] }
  0xd7   :  { %271 = vtanh.f32 %v128_v27  ;;  %v126_v31 = vmul.f32 0.7978846, %v122_v28  ;;  %v125_v32 = vadd.f32 %v121_v29, %v103_v16  ;;  %v119_v33 = vmul.f32 %v115_v30, %v95_v20  ;;  %v248_v28 = vld [vmem:[%s374_s4] ss:$0 sm:$0xff] }
  0xd9   :  { %273 = vtanh.f32 %v126_v31  ;;  %v129_v34 = vmul.f32 0.7978846, %v125_v32  ;;  %v123_v35 = vadd.f32 %v119_v33, %v95_v20 }
  0xdb   :  { %275 = vtanh.f32 %v129_v34  ;;  %v127_v36 = vmul.f32 0.7978846, %v123_v35 }
  0xdd   :  { %277 = vtanh.f32 %v127_v36 }
  0xe4   :  { %v272_v37 = vpop.eup %271 }
  0xe5   :  { %v136_v39 = vadd.f32 1.0, %v272_v37 }
  0xe6   :  { %v274_v40 = vpop.eup %273 }
  0xe7   :  { %v140_v41 = vmul.f32 %v136_v39, %v108_v38  ;;  %v134_v43 = vadd.f32 1.0, %v274_v40 }
  0xe8   :  { %v276_v44 = vpop.eup %275 }
  0xe9   :  { %v150_v45 = vsel %vm50_vm0, %v140_v41, 0.0  ;;  %v138_v46 = vmul.f32 %v134_v43, %v106_v42  ;;  %v137_v48 = vadd.f32 1.0, %v276_v44 }
  0xea   :  { %v278_v49 = vpop.eup %277  ;;  %151 = vadd.xlane.f32.xlu1 %v150_v45 }
  0xeb   :  { %v144_v50 = vsel %vm50_vm0, %v138_v46, 0.0  ;;  %v141_v51 = vmul.f32 %v137_v48, %v109_v47  ;;  %v135_v53 = vadd.f32 1.0, %v278_v49 }
  0xec   :  { %145 = vadd.xlane.f32.xlu0 %v144_v50 }
  0xed   :  { %v153_v54 = vsel %vm50_vm0, %v141_v51, 0.0  ;;  %v139_v55 = vmul.f32 %v135_v53, %v107_v52 }
  0xee   :  { %154 = vadd.xlane.f32.xlu1 %v153_v54 }
  0xef   :  { %v147_v56 = vsel %vm50_vm0, %v139_v55, 0.0 }
  0xf0   :  { %148 = vadd.xlane.f32.xlu0 %v147_v56 }
 0x173   :  { %v152_v57 = vpop.xlane.xlu1 %151 }
 0x174   :  { %v159_v58 = vmul.f32 0.03125, %v152_v57 }
 0x175   :  { %v146_v59 = vpop.xlane.xlu0 %145 }
 0x176   :  { %v157_v60 = vmul.f32 0.03125, %v146_v59  ;;  %v163_v62 = vsub.f32 %v140_v41, %v159_v58 }
 0x177   :  { %v155_v61 = vpop.xlane.xlu1 %154 }
 0x178   :  { %v161_v63 = vsub.f32 %v138_v46, %v157_v60  ;;  %v160_v0 = vmul.f32 0.03125, %v155_v61  ;;  %v167_v7 = vmul.f32 %v163_v62, %v163_v62 }
 0x179   :  { %v149_v1 = vpop.xlane.xlu0 %148 }
 0x17a   :  { %v158_v2 = vmul.f32 0.03125, %v149_v1  ;;  %v165_v3 = vmul.f32 %v161_v63, %v161_v63  ;;  %v164_v4 = vsub.f32 %v141_v51, %v160_v0  ;;  %v175_v9 = vsel %vm50_vm0, %v167_v7, 0.0 }
 0x17c   :  { %v162_v5 = vsub.f32 %v139_v55, %v158_v2  ;;  %v169_v6 = vsel %vm50_vm0, %v165_v3, 0.0  ;;  %v168_v11 = vmul.f32 %v164_v4, %v164_v4 }
 0x17d   :  { %170 = vadd.xlane.f32.xlu0 %v169_v6 }
 0x17e   :  { %v166_v8 = vmul.f32 %v162_v5, %v162_v5  ;;  %v178_v12 = vsel %vm50_vm0, %v168_v11, 0.0 }
 0x180   :  { %v172_v10 = vsel %vm50_vm0, %v166_v8, 0.0 }
 0x181   :  { %176 = vadd.xlane.f32.xlu0 %v175_v9  ;;  %173 = vadd.xlane.f32.xlu1 %v172_v10 }
 0x185   :  { %179 = vadd.xlane.f32.xlu1 %v178_v12 }
 0x206   :  { %v171_v13 = vpop.xlane.xlu0 %170 }
 0x207   :  { %v181_v14 = vmul.f32 0.03125, %v171_v13 }
 0x209   :  { %v185_v15 = vadd.f32 1e-05, %v181_v14 }
 0x20a   :  { %v174_v16 = vpop.xlane.xlu1 %173  ;;  %v177_v17 = vpop.xlane.xlu0 %176 }
 0x20b   :  { %279 = vrsqrt.f32 %v185_v15  ;;  %v182_v18 = vmul.f32 0.03125, %v174_v16  ;;  %v183_v19 = vmul.f32 0.03125, %v177_v17 }
 0x20d   :  { %v186_v20 = vadd.f32 1e-05, %v182_v18  ;;  %v187_v21 = vadd.f32 1e-05, %v183_v19 }
 0x20e   :  { %v180_v22 = vpop.xlane.xlu1 %179 }
 0x20f   :  { %281 = vrsqrt.f32 %v186_v20  ;;  %v184_v23 = vmul.f32 0.03125, %v180_v22 }
 0x210   :  { %283 = vrsqrt.f32 %v187_v21 }
 0x211   :  { %v188_v24 = vadd.f32 1e-05, %v184_v23 }
 0x213   :  { %285 = vrsqrt.f32 %v188_v24 }
 0x218   :  { %v280_v25 = vpop.eup %279 }
 0x219   :  { %v193_v27 = vmul.f32 %v280_v25, %v161_v63 }
 0x21b   :  { %v203_v29 = vmul.f32 %v247_v26, %v193_v27 }
 0x21c   :  { %v282_v30 = vpop.eup %281 }
 0x21d   :  { %v284_v31 = vpop.eup %283  ;;  %v213_v32 = vadd.f32 %v248_v28, %v203_v29  ;;  %v194_v33 = vmul.f32 %v282_v30, %v162_v5 }
 0x21e   :  { %v195_v34 = vmul.f32 %v284_v31, %v163_v62 }
 0x21f   :  { %v253_v35 = vpack.c.bf16 %v213_v32, %v213_v32  ;;  %v204_v36 = vmul.f32 %v247_v26, %v194_v33 }
 0x220   :  { %v286_v37 = vpop.eup %285  ;;  %v205_v38 = vmul.f32 %v247_v26, %v195_v34 }
 0x221   :  { %234 = vst.msk [vmem:[%s375_s5] sm:$0xf] %vm233_vm1, %v253_v35  ;;  %v214_v39 = vadd.f32 %v248_v28, %v204_v36  ;;  %v196_v40 = vmul.f32 %v286_v37, %v164_v4 }
 0x222   :  { %v215_v41 = vadd.f32 %v248_v28, %v205_v38 }
 0x223   :  { %v254_v42 = vpack.c.bf16 %v214_v39, %v214_v39  ;;  %v206_v43 = vmul.f32 %v247_v26, %v196_v40 }
 0x224   :  { %v255_v44 = vpack.c.bf16 %v215_v41, %v215_v41 }
 0x225   :  { %235 = vst.msk [vmem:[%s375_s5 + $0x4] sm:$0xf] %vm233_vm1, %v254_v42  ;;  %v216_v45 = vadd.f32 %v248_v28, %v206_v43 }
 0x226   :  { %236 = vst.msk [vmem:[%s375_s5 + $0x8] sm:$0xf] %vm233_vm1, %v255_v44 }
 0x227   :  { %v256_v46 = vpack.c.bf16 %v216_v45, %v216_v45 }
 0x229   :  { %237 = vst.msk [vmem:[%s375_s5 + $0xc] sm:$0xf] %vm233_vm1, %v256_v46 }

</bundles_post_ra>
